<compile_context>
chip_gen: v5e
topology: v5e:2x2
jax: 0.10.0
libtpu: 0.0.40
codegen_flags: <defaults>
</compile_context>

<pallas_src>
import functools

import jax
import jax.numpy as jnp
from jax.experimental import pallas as pl
from jax.experimental.pallas import tpu as pltpu

LANE = 128


def _round_up(n, m=LANE):
    return ((n + m - 1) // m) * m


def _vae_kernel(in_p, hid_p, lat_p, offsets,
                x_ref, eps_ref, w_ref, b_ref,
                recon_ref, enc_ref):
    o1, o2, o3, o4, o5, o6 = offsets

    def layer(a, rows, off, cols):
        # Static, vreg-aligned slices out of the packed slabs (rows/cols are
        # 128-multiples).  Activation is cast to the weight dtype (bf16) only at
        # the MXU input; accumulation and the bias add stay f32.
        w = w_ref[:rows, off:off + cols]
        b = b_ref[:, off:off + cols]
        return jnp.dot(a.astype(w.dtype), w,
                       preferred_element_type=jnp.float32) + b

    x = x_ref[...]  # already bf16 (pre-cast in wrapper)

    # ---- encoder: Linear -> ReLU -> Linear -> ReLU -> Linear ----
    h = jnp.maximum(layer(x, in_p, o1, hid_p), 0.0)
    h = jnp.maximum(layer(h, hid_p, o2, hid_p), 0.0)
    h3 = layer(h, hid_p, o3, 2 * lat_p)          # [mu | log_var], split at lane lat_p

    # ---- chunk into (mu, log_var); split is vreg-aligned -> free views ----
    mu = h3[:, :lat_p]
    log_var = h3[:, lat_p:]

    # ---- reparameterize: z = mu + eps * exp(0.5 * log_var) ----
    # Padded lanes: log_var=0 -> std=1, eps=0, mu=0 -> z=0 (no effect downstream).
    z = mu + eps_ref[...] * jnp.exp(0.5 * log_var)

    # ---- decoder: Linear -> ReLU -> Linear -> ReLU -> Linear -> Sigmoid ----
    d = jnp.maximum(layer(z, lat_p, o4, hid_p), 0.0)
    d = jnp.maximum(layer(d, hid_p, o5, hid_p), 0.0)
    recon = jax.nn.sigmoid(layer(d, hid_p, o6, in_p))

    # Lane-dense stores (feature dims are multiples of 128 -> unmasked vst).
    recon_ref[...] = recon.astype(recon_ref.dtype)
    enc_ref[...] = h3.astype(enc_ref.dtype)


def prepare_vae_params(params, *, input_size, hidden_size, latent_size,
                       matmul_dtype=jnp.bfloat16):
    """One-time weight prep: transpose to (in, out), pad every feature dim to a
    multiple of 128 lanes, place the encoder head's mu/log_var columns at vreg
    boundaries, pack the six weights / six biases into two slabs, cast weights
    to bf16.  Do this once per training run, not per forward call."""
    IN_P = _round_up(input_size)
    HID_P = _round_up(hidden_size)
    LAT_P = _round_up(latent_size)
    ROW_P = max(IN_P, HID_P, LAT_P)

    def pad_w(w_t, cols):   # w_t is (in, out) already
        return jnp.pad(w_t, ((0, ROW_P - w_t.shape[0]), (0, cols - w_t.shape[1])))

    def pad_b(b, cols):
        return jnp.pad(b.reshape(1, -1), ((0, 0), (0, cols - b.shape[0])))

    ew1 = pad_w(params["ew1"].T, HID_P)
    ew2 = pad_w(params["ew2"].T, HID_P)
    # Encoder head: mu columns at lanes [0, latent), log_var at [LAT_P, LAT_P+latent)
    # so the in-kernel mu/log_var chunk is a vreg-boundary split.
    ew3_t = params["ew3"].T                       # (hidden, 2*latent)
    ew3 = jnp.zeros((ROW_P, 2 * LAT_P), jnp.float32)
    ew3 = ew3.at[:hidden_size, :latent_size].set(ew3_t[:, :latent_size])
    ew3 = ew3.at[:hidden_size, LAT_P:LAT_P + latent_size].set(ew3_t[:, latent_size:])
    dw1 = pad_w(params["dw1"].T, HID_P)
    dw2 = pad_w(params["dw2"].T, HID_P)
    dw3 = pad_w(params["dw3"].T, IN_P)

    eb1 = pad_b(params["eb1"], HID_P)
    eb2 = pad_b(params["eb2"], HID_P)
    eb3 = jnp.zeros((1, 2 * LAT_P), jnp.float32)
    eb3 = eb3.at[0, :latent_size].set(params["eb3"][:latent_size])
    eb3 = eb3.at[0, LAT_P:LAT_P + latent_size].set(params["eb3"][latent_size:])
    db1 = pad_b(params["db1"], HID_P)
    db2 = pad_b(params["db2"], HID_P)
    db3 = pad_b(params["db3"], IN_P)

    weights = [ew1, ew2, ew3, dw1, dw2, dw3]
    biases = [eb1, eb2, eb3, db1, db2, db3]
    offsets, off = [], 0
    for w in weights:
        offsets.append(off)
        off += w.shape[1]

    w_slab = jnp.concatenate(weights, axis=1).astype(matmul_dtype)   # (ROW_P, 896) bf16
    b_slab = jnp.concatenate(biases, axis=1).astype(jnp.float32)     # (1, 896) f32

    return dict(
        w_slab=w_slab, b_slab=b_slab, offsets=tuple(offsets),
        input_size=input_size, hidden_size=hidden_size, latent_size=latent_size,
        in_p=IN_P, hid_p=HID_P, lat_p=LAT_P, row_p=ROW_P,
    )


def vae_forward(x, eps, prepared, *, batch_tile=None):
    """Full VAE forward in one Pallas kernel. Returns (reconstruction, mu, log_var)."""
    B, input_size = x.shape
    assert input_size == prepared["input_size"]
    latent_size = prepared["latent_size"]
    IN_P, HID_P, LAT_P = prepared["in_p"], prepared["hid_p"], prepared["lat_p"]
    w_slab, b_slab = prepared["w_slab"], prepared["b_slab"]
    offsets = prepared["offsets"]

    if batch_tile is None:
        # Big batch tiles fill the MXU M dim and amortize per-step overhead;
        # ~2.5 KiB/row keeps 1024-row tiles inside v5e's 16 MiB scoped VMEM.
        batch_tile = min(B, 1024)
        if (B % batch_tile == 0 and B // batch_tile > 1
                and (B // batch_tile) % 2 == 1 and batch_tile % 16 == 0):
            batch_tile //= 2   # even grid -> "parallel" batch axis shards over v7x's 2 TCs
    assert B % batch_tile == 0, "batch must be divisible by batch_tile"
    assert batch_tile % 8 == 0, "batch_tile must be a multiple of 8 (sublanes)"

    # x is only ever a matmul LHS -> pre-cast to the weight dtype (halves its DMA).
    x_p = jnp.pad(x, ((0, 0), (0, IN_P - input_size))).astype(w_slab.dtype)
    eps_p = jnp.pad(eps, ((0, 0), (0, LAT_P - latent_size))).astype(jnp.float32)

    grid = (B // batch_tile,)
    kernel = functools.partial(_vae_kernel, IN_P, HID_P, LAT_P, offsets)

    out_shapes = (
        jax.ShapeDtypeStruct((B, IN_P), jnp.float32),       # reconstruction (lane padded)
        jax.ShapeDtypeStruct((B, 2 * LAT_P), jnp.float32),  # [mu | log_var] slab
    )

    flops = 2 * B * (IN_P * HID_P + HID_P * HID_P + HID_P * 2 * LAT_P
                     + LAT_P * HID_P + HID_P * HID_P + HID_P * IN_P)
    bytes_accessed = int(
        x_p.size * x_p.dtype.itemsize + eps_p.size * 4
        + w_slab.size * w_slab.dtype.itemsize + b_slab.size * 4
        + B * IN_P * 4 + B * 2 * LAT_P * 4)

    def tiled(feat):
        return pl.BlockSpec((batch_tile, feat), lambda i: (i, 0))

    def run(single_buffer_consts):
        const_kwargs = dict(pipeline_mode=pl.Buffered(1)) if single_buffer_consts else {}

        def const(arr):
            # Constant index_map across the grid -> no need for a double buffer.
            return pl.BlockSpec(arr.shape, lambda i: (0, 0), **const_kwargs)

        return pl.pallas_call(
            kernel,
            out_shape=out_shapes,
            grid_spec=pltpu.PrefetchScalarGridSpec(
                num_scalar_prefetch=0,
                grid=grid,
                in_specs=[
                    tiled(IN_P),      # x   (bf16, lane padded)
                    tiled(LAT_P),     # eps (f32, lane padded)
                    const(w_slab),    # packed bf16 weight slab
                    const(b_slab),    # packed f32 bias slab
                ],
                out_specs=[
                    tiled(IN_P),
                    tiled(2 * LAT_P),
                ],
            ),
            compiler_params=pltpu.CompilerParams(
                dimension_semantics=("parallel",),   # batch axis: megacore-shardable
            ),
            cost_estimate=pl.CostEstimate(
                flops=flops,
                transcendentals=B * (LAT_P + IN_P),
                bytes_accessed=bytes_accessed,
            ),
        )(x_p, eps_p, w_slab, b_slab)

    try:
        recon_p, enc = run(True)
    except Exception:
        # jax version without BlockSpec pipeline_mode / Buffered(1): use defaults.
        recon_p, enc = run(False)

    # Un-pad / split in the wrapper (pure layout plumbing).
    recon = recon_p[:, :input_size]
    mu = enc[:, :latent_size]
    log_var = enc[:, LAT_P:LAT_P + latent_size]
    return recon, mu, log_var


def _init_params(key, input_size, hidden_size, latent_size):
    """Deterministic PyTorch-style uniform(-1/sqrt(fan_in), 1/sqrt(fan_in)) init."""
    specs = {
        "ew1": (hidden_size, input_size),
        "eb1": (hidden_size,),
        "ew2": (hidden_size, hidden_size),
        "eb2": (hidden_size,),
        "ew3": (latent_size * 2, hidden_size),
        "eb3": (latent_size * 2,),
        "dw1": (hidden_size, latent_size),
        "db1": (hidden_size,),
        "dw2": (hidden_size, hidden_size),
        "db2": (hidden_size,),
        "dw3": (input_size, hidden_size),
        "db3": (input_size,),
    }
    fan_in = {
        "ew1": input_size, "eb1": input_size,
        "ew2": hidden_size, "eb2": hidden_size,
        "ew3": hidden_size, "eb3": hidden_size,
        "dw1": latent_size, "db1": latent_size,
        "dw2": hidden_size, "db2": hidden_size,
        "dw3": hidden_size, "db3": hidden_size,
    }
    params = {}
    keys = jax.random.split(key, len(specs))
    for k, (name, shape) in zip(keys, specs.items()):
        bound = 1.0 / jnp.sqrt(jnp.float32(fan_in[name]))
        params[name] = jax.random.uniform(
            k, shape, dtype=jnp.float32, minval=-bound, maxval=bound)
    return params


def _reference_forward(x, eps, params, latent_size, matmul_dtype=jnp.float32):
    """Plain-JAX reference mirroring the PyTorch module (same dtype policy as kernel)."""
    def lin(a, w, b):
        return jnp.dot(a.astype(matmul_dtype), w.T.astype(matmul_dtype),
                       preferred_element_type=jnp.float32) + b

    h = jnp.maximum(lin(x, params["ew1"], params["eb1"]), 0.0)
    h = jnp.maximum(lin(h, params["ew2"], params["eb2"]), 0.0)
    h = lin(h, params["ew3"], params["eb3"])
    mu, log_var = h[:, :latent_size], h[:, latent_size:]
    z = mu + eps * jnp.exp(0.5 * log_var)
    d = jnp.maximum(lin(z, params["dw1"], params["db1"]), 0.0)
    d = jnp.maximum(lin(d, params["dw2"], params["db2"]), 0.0)
    recon = jax.nn.sigmoid(lin(d, params["dw3"], params["db3"]))
    return recon, mu, log_var


if __name__ == "__main__":
    # Small shapes consistent with the module's forward (2-D input: (batch, input_size)).
    B, INPUT, HIDDEN, LATENT = 16, 64, 32, 16

    key = jax.random.PRNGKey(0)
    k_params, k_x, k_eps = jax.random.split(key, 3)

    params = _init_params(k_params, INPUT, HIDDEN, LATENT)
    x = jax.random.uniform(k_x, (B, INPUT), dtype=jnp.float32)        # data in [0, 1)
    eps = jax.random.normal(k_eps, (B, LATENT), dtype=jnp.float32)    # ~ torch.randn_like

    # One-time weight prep (hoisted out of the per-step path).
    prepared = prepare_vae_params(params, input_size=INPUT, hidden_size=HIDDEN,
                                  latent_size=LATENT)
    jax.block_until_ready((prepared["w_slab"], prepared["b_slab"]))

    recon, mu, log_var = vae_forward(x, eps, prepared)
    jax.block_until_ready((recon, mu, log_var))

    # Compare against a reference that applies the same bf16-at-the-MXU policy.
    r_ref, mu_ref, lv_ref = _reference_forward(
        x, eps, params, LATENT, matmul_dtype=jnp.bfloat16)
    assert recon.shape == (B, INPUT) and mu.shape == (B, LATENT) and log_var.shape == (B, LATENT)
    assert jnp.allclose(recon, r_ref, atol=1e-3, rtol=1e-3)
    assert jnp.allclose(mu, mu_ref, atol=1e-3, rtol=1e-3)
    assert jnp.allclose(log_var, lv_ref, atol=1e-3, rtol=1e-3)

    print("KERNEL_OK")
</pallas_src>

<mosaic_0001>
module attributes {stable_mosaic.version = 11 : i64} {
  func.func @_vae_kernel(%arg0: i32, %arg1: memref<16x128xbf16, #tpu.memory_space<vmem>>, %arg2: memref<16x128xf32, #tpu.memory_space<vmem>>, %arg3: memref<128x896xbf16, #tpu.memory_space<vmem>>, %arg4: memref<1x896xf32, #tpu.memory_space<vmem>>, %arg5: memref<16x128xf32, #tpu.memory_space<vmem>>, %arg6: memref<16x256xf32, #tpu.memory_space<vmem>>) attributes {dimension_semantics = [#tpu.dimension_semantics<parallel>], iteration_bounds = array<i64: 1>, scalar_prefetch = 0 : i64, scratch_operands = 0 : i64, tpu.core_type = #tpu.core_type<tc>, window_params = [{transform_indices = @transform_0, window_bounds = array<i64: 16, 128>}, {transform_indices = @transform_1, window_bounds = array<i64: 16, 128>}, {pipeline_mode = #tpu.pipeline_mode<synchronous>, transform_indices = @transform_2, window_bounds = array<i64: 128, 896>}, {pipeline_mode = #tpu.pipeline_mode<synchronous>, transform_indices = @transform_3, window_bounds = array<i64: 1, 896>}, {transform_indices = @transform_4, window_bounds = array<i64: 16, 128>}, {transform_indices = @transform_5, window_bounds = array<i64: 16, 256>}]} {
    %c0 = arith.constant 0 : index
    %c0_0 = arith.constant 0 : index
    %0 = vector.load %arg1[%c0, %c0_0] : memref<16x128xbf16, #tpu.memory_space<vmem>>, vector<16x128xbf16>
    %c0_1 = arith.constant 0 : index
    %c0_2 = arith.constant 0 : index
    %1 = vector.load %arg3[%c0_1, %c0_2] : memref<128x896xbf16, #tpu.memory_space<vmem>>, vector<128x128xbf16>
    %c0_3 = arith.constant 0 : index
    %c0_4 = arith.constant 0 : index
    %2 = vector.load %arg4[%c0_3, %c0_4] : memref<1x896xf32, #tpu.memory_space<vmem>>, vector<1x128xf32>
    %cst = arith.constant dense<0.000000e+00> : vector<16x128xf32>
    %3 = tpu.matmul %0, %1, %cst {dimension_numbers = #tpu.dot_dimension_numbers<[1], [0], [0], [1], [0, 0, 1, 1], [], []>} : vector<16x128xbf16>, vector<128x128xbf16>, vector<16x128xf32> -> vector<16x128xf32>
    %4 = vector.broadcast %2 : vector<1x128xf32> to vector<16x128xf32>
    %5 = arith.addf %3, %4 : vector<16x128xf32>
    %cst_5 = arith.constant 0.000000e+00 : f32
    %6 = vector.broadcast %cst_5 : f32 to vector<16x128xf32>
    %7 = arith.maximumf %5, %6 : vector<16x128xf32>
    %c0_6 = arith.constant 0 : index
    %c128 = arith.constant 128 : index
    %8 = vector.load %arg3[%c0_6, %c128] : memref<128x896xbf16, #tpu.memory_space<vmem>>, vector<128x128xbf16>
    %c0_7 = arith.constant 0 : index
    %c128_8 = arith.constant 128 : index
    %9 = vector.load %arg4[%c0_7, %c128_8] : memref<1x896xf32, #tpu.memory_space<vmem>>, vector<1x128xf32>
    %10 = arith.truncf %7 : vector<16x128xf32> to vector<16x128xbf16>
    %cst_9 = arith.constant dense<0.000000e+00> : vector<16x128xf32>
    %11 = tpu.matmul %10, %8, %cst_9 {dimension_numbers = #tpu.dot_dimension_numbers<[1], [0], [0], [1], [0, 0, 1, 1], [], []>} : vector<16x128xbf16>, vector<128x128xbf16>, vector<16x128xf32> -> vector<16x128xf32>
    %12 = vector.broadcast %9 : vector<1x128xf32> to vector<16x128xf32>
    %13 = arith.addf %11, %12 : vector<16x128xf32>
    %cst_10 = arith.constant 0.000000e+00 : f32
    %14 = vector.broadcast %cst_10 : f32 to vector<16x128xf32>
    %15 = arith.maximumf %13, %14 : vector<16x128xf32>
    %c0_11 = arith.constant 0 : index
    %c256 = arith.constant 256 : index
    %16 = vector.load %arg3[%c0_11, %c256] : memref<128x896xbf16, #tpu.memory_space<vmem>>, vector<128x256xbf16>
    %c0_12 = arith.constant 0 : index
    %c256_13 = arith.constant 256 : index
    %17 = vector.load %arg4[%c0_12, %c256_13] : memref<1x896xf32, #tpu.memory_space<vmem>>, vector<1x256xf32>
    %18 = arith.truncf %15 : vector<16x128xf32> to vector<16x128xbf16>
    %cst_14 = arith.constant dense<0.000000e+00> : vector<16x256xf32>
    %19 = tpu.matmul %18, %16, %cst_14 {dimension_numbers = #tpu.dot_dimension_numbers<[1], [0], [0], [1], [0, 0, 1, 1], [], []>} : vector<16x128xbf16>, vector<128x256xbf16>, vector<16x256xf32> -> vector<16x256xf32>
    %20 = vector.broadcast %17 : vector<1x256xf32> to vector<16x256xf32>
    %21 = arith.addf %19, %20 : vector<16x256xf32>
    %22 = vector.extract_strided_slice %21 {offsets = [0, 0], sizes = [16, 128], strides = [1, 1]} : vector<16x256xf32> to vector<16x128xf32>
    %23 = vector.extract_strided_slice %21 {offsets = [0, 128], sizes = [16, 128], strides = [1, 1]} : vector<16x256xf32> to vector<16x128xf32>
    %c0_15 = arith.constant 0 : index
    %c0_16 = arith.constant 0 : index
    %24 = vector.load %arg2[%c0_15, %c0_16] : memref<16x128xf32, #tpu.memory_space<vmem>>, vector<16x128xf32>
    %cst_17 = arith.constant 5.000000e-01 : f32
    %25 = vector.broadcast %cst_17 : f32 to vector<16x128xf32>
    %26 = arith.mulf %25, %23 : vector<16x128xf32>
    %27 = math.exp %26 : vector<16x128xf32>
    %28 = arith.mulf %24, %27 : vector<16x128xf32>
    %29 = arith.addf %22, %28 : vector<16x128xf32>
    %c0_18 = arith.constant 0 : index
    %c512 = arith.constant 512 : index
    %30 = vector.load %arg3[%c0_18, %c512] : memref<128x896xbf16, #tpu.memory_space<vmem>>, vector<128x128xbf16>
    %c0_19 = arith.constant 0 : index
    %c512_20 = arith.constant 512 : index
    %31 = vector.load %arg4[%c0_19, %c512_20] : memref<1x896xf32, #tpu.memory_space<vmem>>, vector<1x128xf32>
    %32 = arith.truncf %29 : vector<16x128xf32> to vector<16x128xbf16>
    %cst_21 = arith.constant dense<0.000000e+00> : vector<16x128xf32>
    %33 = tpu.matmul %32, %30, %cst_21 {dimension_numbers = #tpu.dot_dimension_numbers<[1], [0], [0], [1], [0, 0, 1, 1], [], []>} : vector<16x128xbf16>, vector<128x128xbf16>, vector<16x128xf32> -> vector<16x128xf32>
    %34 = vector.broadcast %31 : vector<1x128xf32> to vector<16x128xf32>
    %35 = arith.addf %33, %34 : vector<16x128xf32>
    %cst_22 = arith.constant 0.000000e+00 : f32
    %36 = vector.broadcast %cst_22 : f32 to vector<16x128xf32>
    %37 = arith.maximumf %35, %36 : vector<16x128xf32>
    %c0_23 = arith.constant 0 : index
    %c640 = arith.constant 640 : index
    %38 = vector.load %arg3[%c0_23, %c640] : memref<128x896xbf16, #tpu.memory_space<vmem>>, vector<128x128xbf16>
    %c0_24 = arith.constant 0 : index
    %c640_25 = arith.constant 640 : index
    %39 = vector.load %arg4[%c0_24, %c640_25] : memref<1x896xf32, #tpu.memory_space<vmem>>, vector<1x128xf32>
    %40 = arith.truncf %37 : vector<16x128xf32> to vector<16x128xbf16>
    %cst_26 = arith.constant dense<0.000000e+00> : vector<16x128xf32>
    %41 = tpu.matmul %40, %38, %cst_26 {dimension_numbers = #tpu.dot_dimension_numbers<[1], [0], [0], [1], [0, 0, 1, 1], [], []>} : vector<16x128xbf16>, vector<128x128xbf16>, vector<16x128xf32> -> vector<16x128xf32>
    %42 = vector.broadcast %39 : vector<1x128xf32> to vector<16x128xf32>
    %43 = arith.addf %41, %42 : vector<16x128xf32>
    %cst_27 = arith.constant 0.000000e+00 : f32
    %44 = vector.broadcast %cst_27 : f32 to vector<16x128xf32>
    %45 = arith.maximumf %43, %44 : vector<16x128xf32>
    %c0_28 = arith.constant 0 : index
    %c768 = arith.constant 768 : index
    %46 = vector.load %arg3[%c0_28, %c768] : memref<128x896xbf16, #tpu.memory_space<vmem>>, vector<128x128xbf16>
    %c0_29 = arith.constant 0 : index
    %c768_30 = arith.constant 768 : index
    %47 = vector.load %arg4[%c0_29, %c768_30] : memref<1x896xf32, #tpu.memory_space<vmem>>, vector<1x128xf32>
    %48 = arith.truncf %45 : vector<16x128xf32> to vector<16x128xbf16>
    %cst_31 = arith.constant dense<0.000000e+00> : vector<16x128xf32>
    %49 = tpu.matmul %48, %46, %cst_31 {dimension_numbers = #tpu.dot_dimension_numbers<[1], [0], [0], [1], [0, 0, 1, 1], [], []>} : vector<16x128xbf16>, vector<128x128xbf16>, vector<16x128xf32> -> vector<16x128xf32>
    %50 = vector.broadcast %47 : vector<1x128xf32> to vector<16x128xf32>
    %51 = arith.addf %49, %50 : vector<16x128xf32>
    %52 = arith.negf %51 : vector<16x128xf32>
    %53 = math.exp %52 : vector<16x128xf32>
    %cst_32 = arith.constant 1.000000e+00 : f32
    %54 = vector.broadcast %cst_32 : f32 to vector<16x128xf32>
    %55 = arith.addf %54, %53 : vector<16x128xf32>
    %56 = arith.divf %54, %55 : vector<16x128xf32>
    %c0_33 = arith.constant 0 : index
    %c0_34 = arith.constant 0 : index
    %57 = vector.load %arg5[%c0_33, %c0_34] : memref<16x128xf32, #tpu.memory_space<vmem>>, vector<16x128xf32>
    tpu.vector_store %arg5[%c0_33, %c0_34], %56 {strides = array<i32>} : memref<16x128xf32, #tpu.memory_space<vmem>>, vector<16x128xf32>,
    %c0_35 = arith.constant 0 : index
    %c0_36 = arith.constant 0 : index
    %58 = vector.load %arg6[%c0_35, %c0_36] : memref<16x256xf32, #tpu.memory_space<vmem>>, vector<16x256xf32>
    tpu.vector_store %arg6[%c0_35, %c0_36], %21 {strides = array<i32>} : memref<16x256xf32, #tpu.memory_space<vmem>>, vector<16x256xf32>,
    return
  }
  func.func @transform_0(%arg0: i32) -> (i32, i32) {
    %c0_i32 = arith.constant 0 : i32
    %c0_i32_0 = arith.constant 0 : i32
    return %arg0, %c0_i32 : i32, i32
  }
  func.func @transform_1(%arg0: i32) -> (i32, i32) {
    %c0_i32 = arith.constant 0 : i32
    %c0_i32_0 = arith.constant 0 : i32
    return %arg0, %c0_i32 : i32, i32
  }
  func.func @transform_2(%arg0: i32) -> (i32, i32) {
    %c0_i32 = arith.constant 0 : i32
    %c0_i32_0 = arith.constant 0 : i32
    %c0_i32_1 = arith.constant 0 : i32
    return %c0_i32, %c0_i32_0 : i32, i32
  }
  func.func @transform_3(%arg0: i32) -> (i32, i32) {
    %c0_i32 = arith.constant 0 : i32
    %c0_i32_0 = arith.constant 0 : i32
    %c0_i32_1 = arith.constant 0 : i32
    return %c0_i32, %c0_i32_0 : i32, i32
  }
  func.func @transform_4(%arg0: i32) -> (i32, i32) {
    %c0_i32 = arith.constant 0 : i32
    %c0_i32_0 = arith.constant 0 : i32
    return %arg0, %c0_i32 : i32, i32
  }
  func.func @transform_5(%arg0: i32) -> (i32, i32) {
    %c0_i32 = arith.constant 0 : i32
    %c0_i32_0 = arith.constant 0 : i32
    return %arg0, %c0_i32 : i32, i32
  }
}

module attributes {stable_mosaic.version = 11 : i64} {
  func.func @_vae_kernel(%arg0: i32, %arg1: memref<16x128xbf16, #tpu.memory_space<vmem>>, %arg2: memref<16x128xf32, #tpu.memory_space<vmem>>, %arg3: memref<128x896xbf16, #tpu.memory_space<vmem>>, %arg4: memref<1x896xf32, #tpu.memory_space<vmem>>, %arg5: memref<16x128xf32, #tpu.memory_space<vmem>>, %arg6: memref<16x256xf32, #tpu.memory_space<vmem>>) attributes {dimension_semantics = [#tpu.dimension_semantics<parallel>], iteration_bounds = array<i64: 1>, scalar_prefetch = 0 : i64, scratch_operands = 0 : i64, tpu.core_type = #tpu.core_type<tc>, window_params = [{transform_indices = @transform_0, window_bounds = array<i64: 16, 128>}, {transform_indices = @transform_1, window_bounds = array<i64: 16, 128>}, {pipeline_mode = #tpu.pipeline_mode<synchronous>, transform_indices = @transform_2, window_bounds = array<i64: 128, 896>}, {pipeline_mode = #tpu.pipeline_mode<synchronous>, transform_indices = @transform_3, window_bounds = array<i64: 1, 896>}, {transform_indices = @transform_4, window_bounds = array<i64: 16, 128>}, {transform_indices = @transform_5, window_bounds = array<i64: 16, 256>}]} {
    %c0 = arith.constant 0 : index
    %c0_0 = arith.constant 0 : index
    %0 = vector.load %arg1[%c0, %c0_0] : memref<16x128xbf16, #tpu.memory_space<vmem>>, vector<16x128xbf16>
    %c0_1 = arith.constant 0 : index
    %c0_2 = arith.constant 0 : index
    %1 = vector.load %arg3[%c0_1, %c0_2] : memref<128x896xbf16, #tpu.memory_space<vmem>>, vector<128x128xbf16>
    %c0_3 = arith.constant 0 : index
    %c0_4 = arith.constant 0 : index
    %2 = vector.load %arg4[%c0_3, %c0_4] : memref<1x896xf32, #tpu.memory_space<vmem>>, vector<1x128xf32>
    %cst = arith.constant dense<0.000000e+00> : vector<16x128xf32>
    %3 = tpu.matmul %0, %1, %cst {dimension_numbers = #tpu.dot_dimension_numbers<[1], [0], [0], [1], [0, 0, 1, 1], [], []>} : vector<16x128xbf16>, vector<128x128xbf16>, vector<16x128xf32> -> vector<16x128xf32>
    %4 = vector.broadcast %2 : vector<1x128xf32> to vector<16x128xf32>
    %5 = arith.addf %3, %4 : vector<16x128xf32>
    %cst_5 = arith.constant 0.000000e+00 : f32
    %6 = vector.broadcast %cst_5 : f32 to vector<16x128xf32>
    %7 = arith.maximumf %5, %6 : vector<16x128xf32>
    %c0_6 = arith.constant 0 : index
    %c128 = arith.constant 128 : index
    %8 = vector.load %arg3[%c0_6, %c128] : memref<128x896xbf16, #tpu.memory_space<vmem>>, vector<128x128xbf16>
    %c0_7 = arith.constant 0 : index
    %c128_8 = arith.constant 128 : index
    %9 = vector.load %arg4[%c0_7, %c128_8] : memref<1x896xf32, #tpu.memory_space<vmem>>, vector<1x128xf32>
    %10 = arith.truncf %7 : vector<16x128xf32> to vector<16x128xbf16>
    %cst_9 = arith.constant dense<0.000000e+00> : vector<16x128xf32>
    %11 = tpu.matmul %10, %8, %cst_9 {dimension_numbers = #tpu.dot_dimension_numbers<[1], [0], [0], [1], [0, 0, 1, 1], [], []>} : vector<16x128xbf16>, vector<128x128xbf16>, vector<16x128xf32> -> vector<16x128xf32>
    %12 = vector.broadcast %9 : vector<1x128xf32> to vector<16x128xf32>
    %13 = arith.addf %11, %12 : vector<16x128xf32>
    %cst_10 = arith.constant 0.000000e+00 : f32
    %14 = vector.broadcast %cst_10 : f32 to vector<16x128xf32>
    %15 = arith.maximumf %13, %14 : vector<16x128xf32>
    %c0_11 = arith.constant 0 : index
    %c256 = arith.constant 256 : index
    %16 = vector.load %arg3[%c0_11, %c256] : memref<128x896xbf16, #tpu.memory_space<vmem>>, vector<128x256xbf16>
    %c0_12 = arith.constant 0 : index
    %c256_13 = arith.constant 256 : index
    %17 = vector.load %arg4[%c0_12, %c256_13] : memref<1x896xf32, #tpu.memory_space<vmem>>, vector<1x256xf32>
    %18 = arith.truncf %15 : vector<16x128xf32> to vector<16x128xbf16>
    %cst_14 = arith.constant dense<0.000000e+00> : vector<16x256xf32>
    %19 = tpu.matmul %18, %16, %cst_14 {dimension_numbers = #tpu.dot_dimension_numbers<[1], [0], [0], [1], [0, 0, 1, 1], [], []>} : vector<16x128xbf16>, vector<128x256xbf16>, vector<16x256xf32> -> vector<16x256xf32>
    %20 = vector.broadcast %17 : vector<1x256xf32> to vector<16x256xf32>
    %21 = arith.addf %19, %20 : vector<16x256xf32>
    %22 = vector.extract_strided_slice %21 {offsets = [0, 0], sizes = [16, 128], strides = [1, 1]} : vector<16x256xf32> to vector<16x128xf32>
    %23 = vector.extract_strided_slice %21 {offsets = [0, 128], sizes = [16, 128], strides = [1, 1]} : vector<16x256xf32> to vector<16x128xf32>
    %c0_15 = arith.constant 0 : index
    %c0_16 = arith.constant 0 : index
    %24 = vector.load %arg2[%c0_15, %c0_16] : memref<16x128xf32, #tpu.memory_space<vmem>>, vector<16x128xf32>
    %cst_17 = arith.constant 5.000000e-01 : f32
    %25 = vector.broadcast %cst_17 : f32 to vector<16x128xf32>
    %26 = arith.mulf %25, %23 : vector<16x128xf32>
    %27 = math.exp %26 : vector<16x128xf32>
    %28 = arith.mulf %24, %27 : vector<16x128xf32>
    %29 = arith.addf %22, %28 : vector<16x128xf32>
    %c0_18 = arith.constant 0 : index
    %c512 = arith.constant 512 : index
    %30 = vector.load %arg3[%c0_18, %c512] : memref<128x896xbf16, #tpu.memory_space<vmem>>, vector<128x128xbf16>
    %c0_19 = arith.constant 0 : index
    %c512_20 = arith.constant 512 : index
    %31 = vector.load %arg4[%c0_19, %c512_20] : memref<1x896xf32, #tpu.memory_space<vmem>>, vector<1x128xf32>
    %32 = arith.truncf %29 : vector<16x128xf32> to vector<16x128xbf16>
    %cst_21 = arith.constant dense<0.000000e+00> : vector<16x128xf32>
    %33 = tpu.matmul %32, %30, %cst_21 {dimension_numbers = #tpu.dot_dimension_numbers<[1], [0], [0], [1], [0, 0, 1, 1], [], []>} : vector<16x128xbf16>, vector<128x128xbf16>, vector<16x128xf32> -> vector<16x128xf32>
    %34 = vector.broadcast %31 : vector<1x128xf32> to vector<16x128xf32>
    %35 = arith.addf %33, %34 : vector<16x128xf32>
    %cst_22 = arith.constant 0.000000e+00 : f32
    %36 = vector.broadcast %cst_22 : f32 to vector<16x128xf32>
    %37 = arith.maximumf %35, %36 : vector<16x128xf32>
    %c0_23 = arith.constant 0 : index
    %c640 = arith.constant 640 : index
    %38 = vector.load %arg3[%c0_23, %c640] : memref<128x896xbf16, #tpu.memory_space<vmem>>, vector<128x128xbf16>
    %c0_24 = arith.constant 0 : index
    %c640_25 = arith.constant 640 : index
    %39 = vector.load %arg4[%c0_24, %c640_25] : memref<1x896xf32, #tpu.memory_space<vmem>>, vector<1x128xf32>
    %40 = arith.truncf %37 : vector<16x128xf32> to vector<16x128xbf16>
    %cst_26 = arith.constant dense<0.000000e+00> : vector<16x128xf32>
    %41 = tpu.matmul %40, %38, %cst_26 {dimension_numbers = #tpu.dot_dimension_numbers<[1], [0], [0], [1], [0, 0, 1, 1], [], []>} : vector<16x128xbf16>, vector<128x128xbf16>, vector<16x128xf32> -> vector<16x128xf32>
    %42 = vector.broadcast %39 : vector<1x128xf32> to vector<16x128xf32>
    %43 = arith.addf %41, %42 : vector<16x128xf32>
    %cst_27 = arith.constant 0.000000e+00 : f32
    %44 = vector.broadcast %cst_27 : f32 to vector<16x128xf32>
    %45 = arith.maximumf %43, %44 : vector<16x128xf32>
    %c0_28 = arith.constant 0 : index
    %c768 = arith.constant 768 : index
    %46 = vector.load %arg3[%c0_28, %c768] : memref<128x896xbf16, #tpu.memory_space<vmem>>, vector<128x128xbf16>
    %c0_29 = arith.constant 0 : index
    %c768_30 = arith.constant 768 : index
    %47 = vector.load %arg4[%c0_29, %c768_30] : memref<1x896xf32, #tpu.memory_space<vmem>>, vector<1x128xf32>
    %48 = arith.truncf %45 : vector<16x128xf32> to vector<16x128xbf16>
    %cst_31 = arith.constant dense<0.000000e+00> : vector<16x128xf32>
    %49 = tpu.matmul %48, %46, %cst_31 {dimension_numbers = #tpu.dot_dimension_numbers<[1], [0], [0], [1], [0, 0, 1, 1], [], []>} : vector<16x128xbf16>, vector<128x128xbf16>, vector<16x128xf32> -> vector<16x128xf32>
    %50 = vector.broadcast %47 : vector<1x128xf32> to vector<16x128xf32>
    %51 = arith.addf %49, %50 : vector<16x128xf32>
    %52 = arith.negf %51 : vector<16x128xf32>
    %53 = math.exp %52 : vector<16x128xf32>
    %cst_32 = arith.constant 1.000000e+00 : f32
    %54 = vector.broadcast %cst_32 : f32 to vector<16x128xf32>
    %55 = arith.addf %54, %53 : vector<16x128xf32>
    %56 = arith.divf %54, %55 : vector<16x128xf32>
    %c0_33 = arith.constant 0 : index
    %c0_34 = arith.constant 0 : index
    %57 = vector.load %arg5[%c0_33, %c0_34] : memref<16x128xf32, #tpu.memory_space<vmem>>, vector<16x128xf32>
    tpu.vector_store %arg5[%c0_33, %c0_34], %56 {strides = array<i32>} : memref<16x128xf32, #tpu.memory_space<vmem>>, vector<16x128xf32>,
    %c0_35 = arith.constant 0 : index
    %c0_36 = arith.constant 0 : index
    %58 = vector.load %arg6[%c0_35, %c0_36] : memref<16x256xf32, #tpu.memory_space<vmem>>, vector<16x256xf32>
    tpu.vector_store %arg6[%c0_35, %c0_36], %21 {strides = array<i32>} : memref<16x256xf32, #tpu.memory_space<vmem>>, vector<16x256xf32>,
    return
  }
  func.func @transform_0(%arg0: i32) -> (i32, i32) {
    %c0_i32 = arith.constant 0 : i32
    %c0_i32_0 = arith.constant 0 : i32
    return %arg0, %c0_i32 : i32, i32
  }
  func.func @transform_1(%arg0: i32) -> (i32, i32) {
    %c0_i32 = arith.constant 0 : i32
    %c0_i32_0 = arith.constant 0 : i32
    return %arg0, %c0_i32 : i32, i32
  }
  func.func @transform_2(%arg0: i32) -> (i32, i32) {
    %c0_i32 = arith.constant 0 : i32
    %c0_i32_0 = arith.constant 0 : i32
    %c0_i32_1 = arith.constant 0 : i32
    return %c0_i32, %c0_i32_0 : i32, i32
  }
  func.func @transform_3(%arg0: i32) -> (i32, i32) {
    %c0_i32 = arith.constant 0 : i32
    %c0_i32_0 = arith.constant 0 : i32
    %c0_i32_1 = arith.constant 0 : i32
    return %c0_i32, %c0_i32_0 : i32, i32
  }
  func.func @transform_4(%arg0: i32) -> (i32, i32) {
    %c0_i32 = arith.constant 0 : i32
    %c0_i32_0 = arith.constant 0 : i32
    return %arg0, %c0_i32 : i32, i32
  }
  func.func @transform_5(%arg0: i32) -> (i32, i32) {
    %c0_i32 = arith.constant 0 : i32
    %c0_i32_0 = arith.constant 0 : i32
    return %arg0, %c0_i32 : i32, i32
  }
}

</mosaic_0001>

<bundles_post_ra>
// kernel: tpu_custom_call.1
= control target key start
LH: loop header
LB: loop body
LE: loop exit
PB: predicated region body
PF: predicated region fallthrough
CT: control target
= control target key end

     0   :  { %11 = vsyncpa [#allocation3], 0  ;;  %s1278_s0 = inlined_call_operand.hbm [shape: bf16[16,128], index: 0, kind: input, shape index: {}]   ;;  %s1279_s1 = inlined_call_operand.hbm [shape: f32[16,128], index: 1, kind: input, shape index: {}]   ;;  %s1280_s2 = inlined_call_operand.hbm [shape: bf16[128,896], index: 2, kind: input, shape index: {}]   ;;  %s1281_s3 = inlined_call_operand.hbm [shape: f32[1,896], index: 3, kind: input, shape index: {}]   ;;  %s1282_s4 = inlined_call_operand.hbm [shape: f32[16,128], index: 4, kind: output, shape index: {0}]   ;;  %s1283_s5 = inlined_call_operand.hbm [shape: f32[16,256], index: 5, kind: output, shape index: {1}]  }
   0x1   :  { %12 = vsyncpa [#allocation6], 0 }
   0x2   :  { %13 = vsyncpa [#allocation9], 0 }
   0x3   :  { %14 = vsyncpa [#allocation4], 0  ;;  %s33_s20 = sshll.u32 %s1279_s1, 4  ;;  %s34_s20 = int_to_ptr.hbm [resolvable:$true] %s33_s20 }
   0x4   :  { %15 = vsyncpa [#allocation12], 0  ;;  %s1210_s21 = smov [#allocation5]   ;;  %s20_s25 = sshll.u32 %s1278_s0, 4  ;;  %s21_s25 = int_to_ptr.hbm [resolvable:$true] %s20_s25 }
   0x5   :  { %s35_s22 = sshll.u32 %s1210_s21, 4  ;;  %s1211_s26 = smov 128   ;;  %s36_s22 = int_to_ptr.vmem [resolvable:$true] %s35_s22 }
   0x6   :  { %s1212_s27 = smov 8   ;;  %s1213_s28 = smov [#allocation2]  }
   0x7   :  { %41 = dma.hbm_to_vmem [thread:$0]  %s34_s20, 256, %s36_s22, [#allocation6], %s1211_s26, %s1211_s26, %s1212_s27  }
   0x8   :  { %s22_s29 = sshll.u32 %s1213_s28, 4  ;;  %s1214_s1 = smov 64   ;;  %s23_s29 = int_to_ptr.vmem [resolvable:$true] %s22_s29 }
   0x9   :  { %s1215_s30 = smov 4   ;;  %s46_s8 = sshll.u32 %s1280_s2, 4  ;;  %s47_s8 = int_to_ptr.hbm [resolvable:$true] %s46_s8 }
   0xa   :  { %28 = dma.hbm_to_vmem [thread:$0]  %s21_s25, 128, %s23_s29, [#allocation3], %s1214_s1, %s1214_s1, %s1215_s30  }
   0xb   :  { %s1216_s9 = smov [#allocation7]   ;;  %s60_s12 = sshll.u32 %s1281_s3, 4  ;;  %s61_s12 = int_to_ptr.hbm [resolvable:$true] %s60_s12 }
   0xc   :  { %s48_s0 = sshll.u32 %s1216_s9, 4  ;;  %s1217_s13 = smov 448   ;;  %s49_s0 = int_to_ptr.vmem [resolvable:$true] %s48_s0 }
   0xd   :  { %s1218_s14 = smov 28   ;;  %s1219_s15 = smov [#allocation8]  }
   0xe   :  { %54 = dma.hbm_to_vmem [thread:$0]  %s47_s8, 7168, %s49_s0, [#allocation6], %s1217_s13, %s1217_s13, %s1218_s14  }
   0xf   :  { %s62_s16 = sshll.u32 %s1219_s15, 4  ;;  %s63_s16 = int_to_ptr.vmem [resolvable:$true] %s62_s16 }
  0x10   :  { %65 = dma.hbm_to_vmem [thread:$0]  %s61_s12, 112, %s63_s16, [#allocation9]  }
  0x11   :  { %1200 = dma.done.wait [#allocation3], 128  }
  0x12   :  { %1201 = vsyncadd [#allocation3], 4294967168 }
  0x13   :  { %1202 = dma.done.wait [#allocation6], 7424  }
  0x14   :  { %1203 = vsyncadd [#allocation6], 4294959872 }
  0x15   :  { %1204 = dma.done.wait [#allocation9], 112  }
  0x16   :  { %1205 = vsyncadd [#allocation9], 4294967184  ;;  %v772_v0 = vld [vmem:[#allocation7 + $0x188] sm:$0xf]  ;;  %v976_v1 = vld [vmem:[#allocation7 + $0x1a0] sm:$0xf0] }
  0x17   :  { %v768_v2 = vld [vmem:[#allocation7 + $0x150] sm:$0xf]  ;;  %v773_v3 = vor.u32 %v976_v1, %v772_v0  ;;  %v975_v4 = vld [vmem:[#allocation7 + $0x168] sm:$0xf0]  ;;  %v764_v6 = vld [vmem:[#allocation7 + $0x118] sm:$0xf] }
  0x18   :  { %v769_v5 = vor.u32 %v975_v4, %v768_v2  ;;  %v974_v7 = vld [vmem:[#allocation7 + $0x130] sm:$0xf0]  ;;  %v804_v8 = vld [vmem:[#allocation7 + $0x18c] sm:$0xf]  ;;  %v984_v9 = vld [vmem:[#allocation7 + $0x1a4] sm:$0xf0] }
  0x19   :  { %158 = vmatpush.bf16.msra.mxu0 %v773_v3  ;;  %v800_v10 = vld [vmem:[#allocation7 + $0x154] sm:$0xf]  ;;  %v983_v11 = vld [vmem:[#allocation7 + $0x16c] sm:$0xf0]  ;;  %v765_v12 = vor.u32 %v974_v7, %v764_v6  ;;  %v805_v13 = vor.u32 %v984_v9, %v804_v8  ;;  %v760_v14 = vld [vmem:[#allocation7 + $0xe0] sm:$0xf] }
  0x1a   :  { %v973_v15 = vld [vmem:[#allocation7 + $0xf8] sm:$0xf0]  ;;  %v801_v16 = vor.u32 %v983_v11, %v800_v10  ;;  %v982_v18 = vld [vmem:[#allocation7 + $0x134] sm:$0xf0]  ;;  %v756_v20 = vld [vmem:[#allocation7 + $0xa8] sm:$0xf] }
  0x1b   :  { %243 = vmatpush.bf16.msra.mxu1 %v805_v13  ;;  %v796_v17 = vld [vmem:[#allocation7 + $0x11c] sm:$0xf]  ;;  %v761_v19 = vor.u32 %v973_v15, %v760_v14  ;;  %v972_v21 = vld [vmem:[#allocation7 + $0xc0] sm:$0xf0]  ;;  %v981_v24 = vld [vmem:[#allocation7 + $0xfc] sm:$0xf0] }
  0x1c   :  { %v797_v22 = vor.u32 %v982_v18, %v796_v17  ;;  %v792_v23 = vld [vmem:[#allocation7 + $0xe4] sm:$0xf]  ;;  %v757_v25 = vor.u32 %v972_v21, %v756_v20  ;;  %v752_v26 = vld [vmem:[#allocation7 + $0x70] sm:$0xf]  ;;  %v971_v27 = vld [vmem:[#allocation7 + $0x88] sm:$0xf0] }
  0x1d   :  { %159 = vmatpush.bf16.msra.mxu0 %v769_v5  ;;  %v793_v28 = vor.u32 %v981_v24, %v792_v23  ;;  %v753_v29 = vor.u32 %v971_v27, %v752_v26  ;;  %v748_v30 = vld [vmem:[#allocation7 + $0x38] sm:$0xf]  ;;  %v970_v31 = vld [vmem:[#allocation7 + $0x50] sm:$0xf0]  ;;  %v744_v33 = vld [vmem:[#allocation7] sm:$0xf] }
  0x1e   :  { %v749_v32 = vor.u32 %v970_v31, %v748_v30  ;;  %v969_v34 = vld [vmem:[#allocation7 + $0x18] sm:$0xf0]  ;;  %v968_v36 = vld [vmem:[#allocation2] sm:$0xff]  ;;  %v784_v40 = vld [vmem:[#allocation7 + $0x74] sm:$0xf]  ;;  %s1220_s2 = smov [#allocation11]  }
  0x1f   :  { %244 = vmatpush.bf16.msra.mxu1 %v801_v16  ;;  %v745_v35 = vor.u32 %v969_v34, %v744_v33  ;;  %v788_v37 = vld [vmem:[#allocation7 + $0xac] sm:$0xf]  ;;  %v980_v38 = vld [vmem:[#allocation7 + $0xc4] sm:$0xf0]  ;;  %v979_v41 = vld [vmem:[#allocation7 + $0x8c] sm:$0xf0] }
  0x20   :  { %v789_v39 = vor.u32 %v980_v38, %v788_v37  ;;  %v785_v42 = vor.u32 %v979_v41, %v784_v40  ;;  %v780_v43 = vld [vmem:[#allocation7 + $0x3c] sm:$0xf]  ;;  %v978_v44 = vld [vmem:[#allocation7 + $0x54] sm:$0xf0]  ;;  %v776_v46 = vld [vmem:[#allocation7 + $0x4] sm:$0xf] }
  0x21   :  { %160 = vmatpush.bf16.msra.mxu0 %v765_v12  ;;  %v781_v45 = vor.u32 %v978_v44, %v780_v43  ;;  %v977_v47 = vld [vmem:[#allocation7 + $0x1c] sm:$0xf0]  ;;  %v864_v49 = vld [vmem:[#allocation7 + $0x190] sm:$0xf]  ;;  %v1000_v50 = vld [vmem:[#allocation7 + $0x1a8] sm:$0xf0] }
  0x22   :  { %v777_v48 = vor.u32 %v977_v47, %v776_v46  ;;  %v999_v51 = vld [vmem:[#allocation7 + $0x194] sm:$0xf]  ;;  %v865_v52 = vor.u32 %v1000_v50, %v864_v49  ;;  %v866_v53 = vld [vmem:[#allocation7 + $0x1ac] sm:$0xf0]  ;;  %v856_v54 = vld [vmem:[#allocation7 + $0x158] sm:$0xf] }
  0x23   :  { %245 = vmatpush.bf16.msra.mxu1 %v797_v22  ;;  %v998_v55 = vld [vmem:[#allocation7 + $0x170] sm:$0xf0]  ;;  %v869_v56 = vor.u32 %v999_v51, %v866_v53  ;;  %v997_v57 = vld [vmem:[#allocation7 + $0x15c] sm:$0xf]  ;;  %v858_v58 = vld [vmem:[#allocation7 + $0x174] sm:$0xf0] }
  0x24   :  { %362 = vmatpush.bf16.msra.mxu2 %v865_v52  ;;  %v857_v59 = vor.u32 %v998_v55, %v856_v54  ;;  %v861_v60 = vor.u32 %v997_v57, %v858_v58  ;;  %v848_v61 = vld [vmem:[#allocation7 + $0x120] sm:$0xf]  ;;  %v996_v62 = vld [vmem:[#allocation7 + $0x138] sm:$0xf0]  ;;  %v995_v63 = vld [vmem:[#allocation7 + $0x124] sm:$0xf] }
  0x25   :  { %161 = vmatpush.bf16.msra.mxu0 %v761_v19  ;;  %376 = vmatpush.bf16.msra.mxu3 %v869_v56  ;;  %v850_v0 = vld [vmem:[#allocation7 + $0x13c] sm:$0xf0]  ;;  %v849_v1 = vor.u32 %v996_v62, %v848_v61  ;;  %v840_v3 = vld [vmem:[#allocation7 + $0xe8] sm:$0xf]  ;;  %v994_v4 = vld [vmem:[#allocation7 + $0x100] sm:$0xf0] }
  0x26   :  { %v853_v2 = vor.u32 %v995_v63, %v850_v0  ;;  %v993_v5 = vld [vmem:[#allocation7 + $0xec] sm:$0xf]  ;;  %v842_v6 = vld [vmem:[#allocation7 + $0x104] sm:$0xf0]  ;;  %v841_v7 = vor.u32 %v994_v4, %v840_v3  ;;  %v1039_v10 = vld [vmem:[#allocation8] ss:$0 sm:$0xff] }
  0x27   :  { %246 = vmatpush.bf16.msra.mxu1 %v793_v28  ;;  %v845_v8 = vor.u32 %v993_v5, %v842_v6  ;;  %v832_v17 = vld [vmem:[#allocation7 + $0xb0] sm:$0xf]  ;;  %v992_v18 = vld [vmem:[#allocation7 + $0xc8] sm:$0xf0]  ;;  %v991_v19 = vld [vmem:[#allocation7 + $0xb4] sm:$0xf] }
  0x28   :  { %363 = vmatpush.bf16.msra.mxu2 %v857_v59  ;;  %v833_v20 = vor.u32 %v992_v18, %v832_v17  ;;  %v834_v21 = vld [vmem:[#allocation7 + $0xcc] sm:$0xf0]  ;;  %v824_v23 = vld [vmem:[#allocation7 + $0x78] sm:$0xf]  ;;  %v990_v24 = vld [vmem:[#allocation7 + $0x90] sm:$0xf0] }
  0x29   :  { %162 = vmatpush.bf16.msra.mxu0 %v757_v25  ;;  %377 = vmatpush.bf16.msra.mxu3 %v861_v60  ;;  %v837_v22 = vor.u32 %v991_v19, %v834_v21  ;;  %v989_v25 = vld [vmem:[#allocation7 + $0x7c] sm:$0xf]  ;;  %v825_v26 = vor.u32 %v990_v24, %v824_v23  ;;  %v826_v27 = vld [vmem:[#allocation7 + $0x94] sm:$0xf0]  ;;  %v987_v31 = vld [vmem:[#allocation7 + $0x44] sm:$0xf] }
  0x2a   :  { %v829_v28 = vor.u32 %v989_v25, %v826_v27  ;;  %v988_v30 = vld [vmem:[#allocation7 + $0x58] sm:$0xf0]  ;;  %v818_v33 = vld [vmem:[#allocation7 + $0x5c] sm:$0xf0]  ;;  %v985_v37 = vld [vmem:[#allocation7 + $0xc] sm:$0xf] }
  0x2b   :  { %247 = vmatpush.bf16.msra.mxu1 %v789_v39  ;;  %v821_v34 = vor.u32 %v987_v31, %v818_v33  ;;  %v810_v39 = vld [vmem:[#allocation7 + $0x24] sm:$0xf0]  ;;  %v900_v41 = vld [vmem:[#allocation7 + $0x198] sm:$0xf]  ;;  %v896_v52 = vld [vmem:[#allocation7 + $0x160] sm:$0xf] }
  0x2c   :  { %364 = vmatpush.bf16.msra.mxu2 %v849_v1  ;;  %v813_v40 = vor.u32 %v985_v37, %v810_v39  ;;  %v1007_v53 = vld [vmem:[#allocation7 + $0x178] sm:$0xf0]  ;;  %v892_v55 = vld [vmem:[#allocation7 + $0x128] sm:$0xf]  ;;  %v1006_v56 = vld [vmem:[#allocation7 + $0x140] sm:$0xf0] }
  0x2d   :  { %163 = vmatpush.bf16.msra.mxu0 %v753_v29  ;;  %378 = vmatpush.bf16.msra.mxu3 %v853_v2  ;;  %v816_v29 = vld [vmem:[#allocation7 + $0x40] sm:$0xf]  ;;  %v897_v54 = vor.u32 %v1007_v53, %v896_v52  ;;  %v893_v57 = vor.u32 %v1006_v56, %v892_v55  ;;  %v888_v58 = vld [vmem:[#allocation7 + $0xf0] sm:$0xf]  ;;  %v1005_v59 = vld [vmem:[#allocation7 + $0x108] sm:$0xf0] }
  0x2e   :  { %v889_v60 = vor.u32 %v1005_v59, %v888_v58  ;;  %v884_v61 = vld [vmem:[#allocation7 + $0xb8] sm:$0xf]  ;;  %v1004_v62 = vld [vmem:[#allocation7 + $0xd0] sm:$0xf0]  ;;  %v880_v0 = vld [vmem:[#allocation7 + $0x80] sm:$0xf] }
  0x2f   :  { %248 = vmatpush.bf16.msra.mxu1 %v785_v42  ;;  %v1008_v42 = vld [vmem:[#allocation7 + $0x1b0] sm:$0xf0]  ;;  %v885_v63 = vor.u32 %v1004_v62, %v884_v61  ;;  %v1003_v1 = vld [vmem:[#allocation7 + $0x98] sm:$0xf0]  ;;  %v876_v2 = vld [vmem:[#allocation7 + $0x48] sm:$0xf] }
  0x30   :  { %365 = vmatpush.bf16.msra.mxu2 %v841_v7  ;;  %v901_v43 = vor.u32 %v1008_v42, %v900_v41  ;;  %v881_v3 = vor.u32 %v1003_v1, %v880_v0  ;;  %v1002_v4 = vld [vmem:[#allocation7 + $0x60] sm:$0xf0]  ;;  %v872_v6 = vld [vmem:[#allocation7 + $0x10] sm:$0xf]  ;;  %v1001_v7 = vld [vmem:[#allocation7 + $0x28] sm:$0xf0] }
  0x31   :  { %164 = vmatpush.bf16.msra.mxu0 %v749_v32  ;;  %379 = vmatpush.bf16.msra.mxu3 %v845_v8  ;;  %v817_v32 = vor.u32 %v988_v30, %v816_v29  ;;  %v877_v5 = vor.u32 %v1002_v4, %v876_v2  ;;  %v873_v8 = vor.u32 %v1001_v7, %v872_v6  ;;  %v1014_v21 = vld [vmem:[#allocation7 + $0x144] sm:$0xf0]  ;;  %v1013_v27 = vld [vmem:[#allocation7 + $0x10c] sm:$0xf0]  ;;  %v1024_v58 = vld [vmem:[#allocation7 + $0x1b8] sm:$0xf0] }
  0x32   :  { %v390_v37 = vld [vmem:[#allocation5] sm:$0xff]  ;;  %v1010_v52 = vld [vmem:[#allocation7 + $0x64] sm:$0xf0]  ;;  %v1023_v61 = vld [vmem:[#allocation7 + $0x180] sm:$0xf0]  ;;  %s716_s3 = sshll.u32 %s1220_s2, 4  ;;  %s717_s3 = int_to_ptr.vmem [resolvable:$true] %s716_s3 }
  0x33   :  { %249 = vmatpush.bf16.msra.mxu1 %v781_v45  ;;  %v1040_v45 = vld [vmem:[#allocation8 + $0x1] ss:$0 sm:$0xff]  ;;  %v1009_v55 = vld [vmem:[#allocation7 + $0x2c] sm:$0xf0]  ;;  %v960_v59 = vld [vmem:[#allocation7 + $0x168] sm:$0xf] }
  0x34   :  { %366 = vmatpush.bf16.msra.mxu2 %v833_v20  ;;  %v924_v20 = vld [vmem:[#allocation7 + $0x12c] sm:$0xf]  ;;  %v961_v62 = vor.u32 %v1023_v61, %v960_v59  ;;  %v952_v2 = vld [vmem:[#allocation7 + $0xf8] sm:$0xf]  ;;  %v1041_v6 = vld [vmem:[#allocation8 + $0x4] ss:$0 sm:$0xff] }
  0x35   :  { %165 = vmatpush.bf16.msra.mxu0 %v745_v35  ;;  %380 = vmatpush.bf16.msra.mxu3 %v837_v22  ;;  %v808_v35 = vld [vmem:[#allocation7 + $0x8] sm:$0xf]  ;;  %v925_v25 = vor.u32 %v1014_v21, %v924_v20  ;;  %v1022_v0 = vld [vmem:[#allocation7 + $0x148] sm:$0xf0]  ;;  %s718_s19 = sshll.u32 %s1283_s5, 4  ;;  %s1221_s20 = smov 256   ;;  %s719_s19 = int_to_ptr.hbm [resolvable:$true] %s718_s19 }
  0x36   :  { %v1018_v20 = vld [vmem:[#allocation7 + $0x68] sm:$0xf0]  ;;  %s1222_s21 = smov 16   ;;  %s1223_s5 = smov [#allocation10]  }
  0x37   :  { %250 = vmatpush.bf16.msra.mxu1 %v777_v48  ;;  %s703_s22 = sshll.u32 %s1223_s5, 4  ;;  %s705_s25 = sshll.u32 %s1282_s4, 4  ;;  %s704_s22 = int_to_ptr.vmem [resolvable:$true] %s703_s22  ;;  %s706_s25 = int_to_ptr.hbm [resolvable:$true] %s705_s25 }
  0x38   :  { %166 = vmatmul.bf16.vlgmr.msra.gmra.mxu0 %v968_v36  ;;  %367 = vmatpush.bf16.msra.mxu2 %v825_v26  ;;  %v986_v36 = vld [vmem:[#allocation7 + $0x20] sm:$0xf0]  ;;  %v920_v26 = vld [vmem:[#allocation7 + $0xf4] sm:$0xf] }
  0x39   :  { %381 = vmatpush.bf16.msra.mxu3 %v829_v28  ;;  %v809_v38 = vor.u32 %v986_v36, %v808_v35  ;;  %471 = vmatpush.bf16.msrb.mxu0 %v901_v43  ;;  %v921_v29 = vor.u32 %v1013_v27, %v920_v26  ;;  %v1042_v26 = vld [vmem:[#allocation8 + $0x5] ss:$0 sm:$0xff] }
  0x3c   :  { %368 = vmatpush.bf16.msra.mxu2 %v817_v32 }
  0x3d   :  { %382 = vmatpush.bf16.msra.mxu3 %v821_v34  ;;  %472 = vmatpush.bf16.msrb.mxu0 %v897_v54  ;;  %v904_v54 = vld [vmem:[#allocation7 + $0x14] sm:$0xf] }
  0x3e   :  { %v905_v56 = vor.u32 %v1009_v55, %v904_v54 }
  0x40   :  { %369 = vmatpush.bf16.msra.mxu2 %v809_v38  ;;  %v391_v38 = vld [vmem:[#allocation5 + $0x8] sm:$0xff] }
  0x41   :  { %383 = vmatpush.bf16.msra.mxu3 %v813_v40  ;;  %473 = vmatpush.bf16.msrb.mxu0 %v893_v57  ;;  %v964_v57 = vld [vmem:[#allocation7 + $0x1a0] sm:$0xf] }
  0x45   :  { %474 = vmatpush.bf16.msrb.mxu0 %v889_v60  ;;  %v965_v60 = vor.u32 %v1024_v58, %v964_v57 }
  0x47   :  { %641 = vmatpush.bf16.msrb.mxu2 %v965_v60 }
  0x49   :  { %475 = vmatpush.bf16.msrb.mxu0 %v885_v63  ;;  %v956_v63 = vld [vmem:[#allocation7 + $0x130] sm:$0xf] }
  0x4a   :  { %v957_v1 = vor.u32 %v1022_v0, %v956_v63 }
  0x4b   :  { %642 = vmatpush.bf16.msrb.mxu2 %v961_v62 }
  0x4d   :  { %476 = vmatpush.bf16.msrb.mxu0 %v881_v3  ;;  %v1021_v3 = vld [vmem:[#allocation7 + $0x110] sm:$0xf0] }
  0x4e   :  { %v953_v4 = vor.u32 %v1021_v3, %v952_v2 }
  0x4f   :  { %643 = vmatpush.bf16.msrb.mxu2 %v957_v1 }
  0x51   :  { %477 = vmatpush.bf16.msrb.mxu0 %v877_v5 }
  0x53   :  { %644 = vmatpush.bf16.msrb.mxu2 %v953_v4 }
  0x55   :  { %478 = vmatpush.bf16.msrb.mxu0 %v873_v8 }
  0xb5   :  { %v167_v9 = vpop.f32.mrf.mxu0 }
  0xb6   :  { %v168_v11 = vadd.f32 %v1039_v10, %v167_v9  ;;  %v275_v9 = vld [vmem:[#allocation8 + $0x2] sm:$0x3] }
  0xb8   :  { %v172_v14 = vmax.f32 %v168_v11, 0.0  ;;  %v1016_v11 = vld [vmem:[#allocation7 + $0x1b4] sm:$0xf0] }
  0xbd   :  { %v169_v12 = vpop.f32.mrf.mxu0 }
  0xbe   :  { %v170_v13 = vadd.f32 %v1039_v10, %v169_v12  ;;  %v932_v10 = vld [vmem:[#allocation7 + $0x19c] sm:$0xf]  ;;  %v928_v12 = vld [vmem:[#allocation7 + $0x164] sm:$0xf] }
  0xc0   :  { %v173_v15 = vmax.f32 %v170_v13, 0.0  ;;  %v278_v13 = vperm.slane %v275_v9, 0 }
  0xc2   :  { %v191_v16 = vpack.c.bf16 %v173_v15, %v172_v14  ;;  %v279_v14 = vperm.slane %v275_v9, 1  ;;  %v933_v15 = vor.u32 %v1016_v11, %v932_v10 }
  0xc4   :  { %251 = vmatmul.bf16.vlgmr.msra.gmra.mxu1 %v191_v16  ;;  %v1015_v16 = vld [vmem:[#allocation7 + $0x17c] sm:$0xf0] }
  0xc5   :  { %556 = vmatpush.bf16.msrb.mxu1 %v933_v15  ;;  %v929_v17 = vor.u32 %v1015_v16, %v928_v12  ;;  %v944_v16 = vld [vmem:[#allocation7 + $0x88] sm:$0xf] }
  0xc9   :  { %557 = vmatpush.bf16.msrb.mxu1 %v929_v17  ;;  %v1019_v17 = vld [vmem:[#allocation7 + $0xa0] sm:$0xf0] }
  0xcd   :  { %558 = vmatpush.bf16.msrb.mxu1 %v925_v25 }
  0xd1   :  { %559 = vmatpush.bf16.msrb.mxu1 %v921_v29 }
 0x141   :  { %v252_v44 = vpop.f32.mrf.mxu1 }
 0x142   :  { %v253_v46 = vadd.f32 %v1040_v45, %v252_v44 }
 0x144   :  { %v257_v49 = vmax.f32 %v253_v46, 0.0  ;;  %v1012_v46 = vld [vmem:[#allocation7 + $0xd4] sm:$0xf0] }
 0x149   :  { %v254_v47 = vpop.f32.mrf.mxu1 }
 0x14a   :  { %v255_v48 = vadd.f32 %v1040_v45, %v254_v47  ;;  %v916_v45 = vld [vmem:[#allocation7 + $0xbc] sm:$0xf] }
 0x14b   :  { %v917_v47 = vor.u32 %v1012_v46, %v916_v45 }
 0x14c   :  { %v258_v50 = vmax.f32 %v255_v48, 0.0  ;;  %v912_v48 = vld [vmem:[#allocation7 + $0x84] sm:$0xf] }
 0x14d   :  { %560 = vmatpush.bf16.msrb.mxu1 %v917_v47 }
 0x14e   :  { %v276_v51 = vpack.c.bf16 %v258_v50, %v257_v49  ;;  %v1011_v49 = vld [vmem:[#allocation7 + $0x9c] sm:$0xf0] }
 0x14f   :  { %v913_v50 = vor.u32 %v1011_v49, %v912_v48 }
 0x150   :  { %370 = vmatmul.bf16.vlgmr.msra.gmra.mxu2 %v276_v51  ;;  %384 = vmatmul.bf16.vlgmr.msra.gmra.mxu3 %v276_v51  ;;  %v908_v51 = vld [vmem:[#allocation7 + $0x4c] sm:$0xf] }
 0x151   :  { %561 = vmatpush.bf16.msrb.mxu1 %v913_v50  ;;  %v909_v53 = vor.u32 %v1010_v52, %v908_v51 }
 0x155   :  { %562 = vmatpush.bf16.msrb.mxu1 %v909_v53 }
 0x159   :  { %563 = vmatpush.bf16.msrb.mxu1 %v905_v56 }
 0x1d3   :  { %v371_v18 = vpop.f32.mrf.mxu2  ;;  %v385_v19 = vpop.f32.mrf.mxu3 }
 0x1d4   :  { %v372_v22 = vadd.f32 %v371_v18, %v278_v13  ;;  %v386_v23 = vadd.f32 %v385_v19, %v279_v14  ;;  %v945_v18 = vor.u32 %v1019_v17, %v944_v16  ;;  %v940_v19 = vld [vmem:[#allocation7 + $0x50] sm:$0xf] }
 0x1d5   :  { %v941_v21 = vor.u32 %v1018_v20, %v940_v19 }
 0x1d6   :  { %695 = vst [vmem:[#allocation11] sm:$0xff] %v372_v22  ;;  %v392_v24 = vmul.f32 0.5, %v386_v23 }
 0x1d7   :  { %696 = vst [vmem:[#allocation11 + $0x8] sm:$0xff] %v386_v23  ;;  %v1017_v23 = vld [vmem:[#allocation7 + $0x30] sm:$0xf0] }
 0x1d8   :  { %v394_v28 = vmul.f32 1.442695, %v392_v24 }
 0x1da   :  { %1044 = vpow2.f32 %v394_v28 }
 0x1db   :  { %v373_v30 = vpop.f32.mrf.mxu2  ;;  %v387_v31 = vpop.f32.mrf.mxu3 }
 0x1dc   :  { %v374_v32 = vadd.f32 %v373_v30, %v278_v13  ;;  %v388_v33 = vadd.f32 %v387_v31, %v279_v14  ;;  %v948_v13 = vld [vmem:[#allocation7 + $0xc0] sm:$0xf]  ;;  %v1020_v14 = vld [vmem:[#allocation7 + $0xd8] sm:$0xf0] }
 0x1dd   :  { %v949_v15 = vor.u32 %v1020_v14, %v948_v13 }
 0x1de   :  { %697 = vst [vmem:[#allocation11 + $0x10] sm:$0xff] %v374_v32  ;;  %v393_v34 = vmul.f32 0.5, %v388_v33 }
 0x1df   :  { %698 = vst [vmem:[#allocation11 + $0x18] sm:$0xff] %v388_v33  ;;  %645 = vmatpush.bf16.msrb.mxu2 %v949_v15  ;;  %v1043_v33 = vld [vmem:[#allocation8 + $0x6] ss:$0 sm:$0xff] }
 0x1e0   :  { %v396_v35 = vmul.f32 1.442695, %v393_v34  ;;  %v1045_v36 = vpop.eup %1044  ;;  %724 = dma.vmem_to_hbm [thread:$0]  %s717_s3, 512, %s719_s19, [#allocation12], %s1221_s20, %s1221_s20, %s1222_s21  }
 0x1e1   :  { %v398_v39 = vmul.f32 %v1045_v36, %v390_v37 }
 0x1e2   :  { %1046 = vpow2.f32 %v396_v35 }
 0x1e3   :  { %v400_v42 = vadd.f32 %v398_v39, %v372_v22  ;;  %646 = vmatpush.bf16.msrb.mxu2 %v945_v18  ;;  %v936_v22 = vld [vmem:[#allocation7 + $0x18] sm:$0xf] }
 0x1e4   :  { %v937_v24 = vor.u32 %v1017_v23, %v936_v22 }
 0x1e7   :  { %647 = vmatpush.bf16.msrb.mxu2 %v941_v21 }
 0x1e8   :  { %v1047_v40 = vpop.eup %1046 }
 0x1e9   :  { %v399_v41 = vmul.f32 %v1047_v40, %v391_v38 }
 0x1eb   :  { %v401_v43 = vadd.f32 %v399_v41, %v374_v32  ;;  %648 = vmatpush.bf16.msrb.mxu2 %v937_v24 }
 0x1ed   :  { %v419_v44 = vpack.c.bf16 %v401_v43, %v400_v42 }
 0x1ef   :  { %479 = vmatmul.bf16.vlgmr.msrb.gmra.mxu0 %v419_v44 }
 0x26c   :  { %v480_v5 = vpop.f32.mrf.mxu0 }
 0x26d   :  { %v481_v7 = vadd.f32 %v1041_v6, %v480_v5 }
 0x26f   :  { %v485_v10 = vmax.f32 %v481_v7, 0.0 }
 0x274   :  { %v482_v8 = vpop.f32.mrf.mxu0 }
 0x275   :  { %v483_v9 = vadd.f32 %v1041_v6, %v482_v8 }
 0x277   :  { %v486_v11 = vmax.f32 %v483_v9, 0.0 }
 0x279   :  { %v504_v12 = vpack.c.bf16 %v486_v11, %v485_v10 }
 0x27b   :  { %564 = vmatmul.bf16.vlgmr.msrb.gmra.mxu1 %v504_v12 }
 0x2f8   :  { %v565_v25 = vpop.f32.mrf.mxu1 }
 0x2f9   :  { %v566_v27 = vadd.f32 %v1042_v26, %v565_v25 }
 0x2fb   :  { %v570_v30 = vmax.f32 %v566_v27, 0.0 }
 0x300   :  { %v567_v28 = vpop.f32.mrf.mxu1 }
 0x301   :  { %v568_v29 = vadd.f32 %v1042_v26, %v567_v28 }
 0x303   :  { %v571_v31 = vmax.f32 %v568_v29, 0.0 }
 0x305   :  { %v589_v32 = vpack.c.bf16 %v571_v31, %v570_v30 }
 0x307   :  { %649 = vmatmul.bf16.vlgmr.msrb.gmra.mxu2 %v589_v32 }
 0x38a   :  { %v650_v34 = vpop.f32.mrf.mxu2 }
 0x38b   :  { %v651_v35 = vadd.f32 %v1043_v33, %v650_v34 }
 0x38d   :  { %v966_v36 = vmul.f32 -1.442695, %v651_v35 }
 0x38f   :  { %1048 = vpow2.f32 %v966_v36 }
 0x392   :  { %v652_v37 = vpop.f32.mrf.mxu2 }
 0x393   :  { %v653_v38 = vadd.f32 %v1043_v33, %v652_v37 }
 0x395   :  { %v1049_v39 = vpop.eup %1048  ;;  %v967_v40 = vmul.f32 -1.442695, %v653_v38 }
 0x396   :  { %v661_v41 = vadd.f32 1.0, %v1049_v39 }
 0x397   :  { %1050 = vpow2.f32 %v967_v40 }
 0x398   :  { %1052 = vrcp.f32 %v661_v41  ;;  %v674_v47 = vand.u32 2147483648, %v661_v41  ;;  %v672_v49 = vand.u32 2147483647, %v661_v41  ;;  %vm668_vm1 = vweird.f32 %v661_v41 }
 0x39a   :  { %v675_v52 = vor.u32 1.1754944e-38, %v674_v47  ;;  %vm673_vm3 = vcmp.eq.f32.partialorder %v672_v49, 8.507059e+37 }
 0x39d   :  { %v1051_v42 = vpop.eup %1050 }
 0x39e   :  { %v1053_v43 = vpop.eup %1052  ;;  %v662_v44 = vadd.f32 1.0, %v1051_v42 }
 0x39f   :  { %v664_v45 = vmul.f32 %v1053_v43, %v661_v41  ;;  %vm669_vm0 = vweird.f32 %v1053_v43 }
 0x3a0   :  { %1054 = vrcp.f32 %v662_v44  ;;  %vm670_vm2 = vmor %vm668_vm1, %vm669_vm0  ;;  %v689_v57 = vand.u32 2147483648, %v662_v44  ;;  %v687_v59 = vand.u32 2147483647, %v662_v44  ;;  %vm683_vm5 = vweird.f32 %v662_v44 }
 0x3a1   :  { %v665_v46 = vsub.f32 1.0, %v664_v45 }
 0x3a2   :  { %v690_v61 = vor.u32 1.1754944e-38, %v689_v57  ;;  %vm688_vm7 = vcmp.eq.f32.partialorder %v687_v59, 8.507059e+37 }
 0x3a3   :  { %v666_v48 = vmul.f32 %v1053_v43, %v665_v46 }
 0x3a5   :  { %v667_v50 = vadd.f32 %v1053_v43, %v666_v48 }
 0x3a6   :  { %v1055_v51 = vpop.eup %1054 }
 0x3a7   :  { %v679_v53 = vmul.f32 %v1055_v51, %v662_v44  ;;  %v671_v54 = vsel %vm670_vm2, %v1053_v43, %v667_v50  ;;  %vm684_vm4 = vweird.f32 %v1055_v51 }
 0x3a8   :  { %v676_v55 = vsel %vm673_vm3, %v675_v52, %v671_v54  ;;  %vm685_vm6 = vmor %vm683_vm5, %vm684_vm4 }
 0x3a9   :  { %v680_v56 = vsub.f32 1.0, %v679_v53  ;;  %693 = vst [vmem:[#allocation10] sm:$0xff] %v676_v55 }
 0x3ab   :  { %v681_v58 = vmul.f32 %v1055_v51, %v680_v56 }
 0x3ad   :  { %v682_v60 = vadd.f32 %v1055_v51, %v681_v58 }
 0x3af   :  { %v686_v62 = vsel %vm685_vm6, %v1055_v51, %v682_v60 }
 0x3b0   :  { %v691_v63 = vsel %vm688_vm7, %v690_v61, %v686_v62 }
 0x3b1   :  { %694 = vst [vmem:[#allocation10 + $0x8] sm:$0xff] %v691_v63 }
 0x3b2   :  { %711 = dma.vmem_to_hbm [thread:$0]  %s704_s22, 256, %s706_s25, [#allocation4], %s1211_s26, %s1211_s26, %s1212_s27  }
 0x3b3   :  { %1206 = dma.done.wait [#allocation4], 256  }
 0x3b4   :  { %1207 = vsyncadd [#allocation4], 4294967040 }
 0x3b5   :  { %1208 = dma.done.wait [#allocation12], 512  }
 0x3b6   :  { %1209 = vsyncadd [#allocation12], 4294966784 }
 0x3b7   :  { %733 = vsyncpa [#allocation3], 1 }
 0x3b8   :  { %734 = vsyncpa [#allocation6], 1 }
 0x3b9   :  { %735 = vsyncpa [#allocation9], 1 }
 0x3ba   :  { %736 = vsyncpa [#allocation4], 1 }
 0x3bb   :  { %737 = vsyncpa [#allocation12], 1 }

// kernel: tpu_custom_call.1
= control target key start
LH: loop header
LB: loop body
LE: loop exit
PB: predicated region body
PF: predicated region fallthrough
CT: control target
= control target key end

     0   :  { %11 = vsyncpa [#allocation3], 0  ;;  %s1278_s0 = inlined_call_operand.hbm [shape: bf16[16,128], index: 0, kind: input, shape index: {}]   ;;  %s1279_s1 = inlined_call_operand.hbm [shape: f32[16,128], index: 1, kind: input, shape index: {}]   ;;  %s1280_s2 = inlined_call_operand.hbm [shape: bf16[128,896], index: 2, kind: input, shape index: {}]   ;;  %s1281_s3 = inlined_call_operand.hbm [shape: f32[1,896], index: 3, kind: input, shape index: {}]   ;;  %s1282_s4 = inlined_call_operand.hbm [shape: f32[16,128], index: 4, kind: output, shape index: {0}]   ;;  %s1283_s5 = inlined_call_operand.hbm [shape: f32[16,256], index: 5, kind: output, shape index: {1}]  }
   0x1   :  { %12 = vsyncpa [#allocation6], 0 }
   0x2   :  { %13 = vsyncpa [#allocation9], 0 }
   0x3   :  { %14 = vsyncpa [#allocation4], 0  ;;  %s33_s20 = sshll.u32 %s1279_s1, 4  ;;  %s34_s20 = int_to_ptr.hbm [resolvable:$true] %s33_s20 }
   0x4   :  { %15 = vsyncpa [#allocation12], 0  ;;  %s1210_s21 = smov [#allocation5]   ;;  %s20_s25 = sshll.u32 %s1278_s0, 4  ;;  %s21_s25 = int_to_ptr.hbm [resolvable:$true] %s20_s25 }
   0x5   :  { %s35_s22 = sshll.u32 %s1210_s21, 4  ;;  %s1211_s26 = smov 128   ;;  %s36_s22 = int_to_ptr.vmem [resolvable:$true] %s35_s22 }
   0x6   :  { %s1212_s27 = smov 8   ;;  %s1213_s28 = smov [#allocation2]  }
   0x7   :  { %41 = dma.hbm_to_vmem [thread:$0]  %s34_s20, 256, %s36_s22, [#allocation6], %s1211_s26, %s1211_s26, %s1212_s27  }
   0x8   :  { %s22_s29 = sshll.u32 %s1213_s28, 4  ;;  %s1214_s1 = smov 64   ;;  %s23_s29 = int_to_ptr.vmem [resolvable:$true] %s22_s29 }
   0x9   :  { %s1215_s30 = smov 4   ;;  %s46_s8 = sshll.u32 %s1280_s2, 4  ;;  %s47_s8 = int_to_ptr.hbm [resolvable:$true] %s46_s8 }
   0xa   :  { %28 = dma.hbm_to_vmem [thread:$0]  %s21_s25, 128, %s23_s29, [#allocation3], %s1214_s1, %s1214_s1, %s1215_s30  }
   0xb   :  { %s1216_s9 = smov [#allocation7]   ;;  %s60_s12 = sshll.u32 %s1281_s3, 4  ;;  %s61_s12 = int_to_ptr.hbm [resolvable:$true] %s60_s12 }
   0xc   :  { %s48_s0 = sshll.u32 %s1216_s9, 4  ;;  %s1217_s13 = smov 448   ;;  %s49_s0 = int_to_ptr.vmem [resolvable:$true] %s48_s0 }
   0xd   :  { %s1218_s14 = smov 28   ;;  %s1219_s15 = smov [#allocation8]  }
   0xe   :  { %54 = dma.hbm_to_vmem [thread:$0]  %s47_s8, 7168, %s49_s0, [#allocation6], %s1217_s13, %s1217_s13, %s1218_s14  }
   0xf   :  { %s62_s16 = sshll.u32 %s1219_s15, 4  ;;  %s63_s16 = int_to_ptr.vmem [resolvable:$true] %s62_s16 }
  0x10   :  { %65 = dma.hbm_to_vmem [thread:$0]  %s61_s12, 112, %s63_s16, [#allocation9]  }
  0x11   :  { %1200 = dma.done.wait [#allocation3], 128  }
  0x12   :  { %1201 = vsyncadd [#allocation3], 4294967168 }
  0x13   :  { %1202 = dma.done.wait [#allocation6], 7424  }
  0x14   :  { %1203 = vsyncadd [#allocation6], 4294959872 }
  0x15   :  { %1204 = dma.done.wait [#allocation9], 112  }
  0x16   :  { %1205 = vsyncadd [#allocation9], 4294967184  ;;  %v772_v0 = vld [vmem:[#allocation7 + $0x188] sm:$0xf]  ;;  %v976_v1 = vld [vmem:[#allocation7 + $0x1a0] sm:$0xf0] }
  0x17   :  { %v768_v2 = vld [vmem:[#allocation7 + $0x150] sm:$0xf]  ;;  %v773_v3 = vor.u32 %v976_v1, %v772_v0  ;;  %v975_v4 = vld [vmem:[#allocation7 + $0x168] sm:$0xf0]  ;;  %v764_v6 = vld [vmem:[#allocation7 + $0x118] sm:$0xf] }
  0x18   :  { %v769_v5 = vor.u32 %v975_v4, %v768_v2  ;;  %v974_v7 = vld [vmem:[#allocation7 + $0x130] sm:$0xf0]  ;;  %v804_v8 = vld [vmem:[#allocation7 + $0x18c] sm:$0xf]  ;;  %v984_v9 = vld [vmem:[#allocation7 + $0x1a4] sm:$0xf0] }
  0x19   :  { %158 = vmatpush.bf16.msra.mxu0 %v773_v3  ;;  %v800_v10 = vld [vmem:[#allocation7 + $0x154] sm:$0xf]  ;;  %v983_v11 = vld [vmem:[#allocation7 + $0x16c] sm:$0xf0]  ;;  %v765_v12 = vor.u32 %v974_v7, %v764_v6  ;;  %v805_v13 = vor.u32 %v984_v9, %v804_v8  ;;  %v760_v14 = vld [vmem:[#allocation7 + $0xe0] sm:$0xf] }
  0x1a   :  { %v973_v15 = vld [vmem:[#allocation7 + $0xf8] sm:$0xf0]  ;;  %v801_v16 = vor.u32 %v983_v11, %v800_v10  ;;  %v982_v18 = vld [vmem:[#allocation7 + $0x134] sm:$0xf0]  ;;  %v756_v20 = vld [vmem:[#allocation7 + $0xa8] sm:$0xf] }
  0x1b   :  { %243 = vmatpush.bf16.msra.mxu1 %v805_v13  ;;  %v796_v17 = vld [vmem:[#allocation7 + $0x11c] sm:$0xf]  ;;  %v761_v19 = vor.u32 %v973_v15, %v760_v14  ;;  %v972_v21 = vld [vmem:[#allocation7 + $0xc0] sm:$0xf0]  ;;  %v981_v24 = vld [vmem:[#allocation7 + $0xfc] sm:$0xf0] }
  0x1c   :  { %v797_v22 = vor.u32 %v982_v18, %v796_v17  ;;  %v792_v23 = vld [vmem:[#allocation7 + $0xe4] sm:$0xf]  ;;  %v757_v25 = vor.u32 %v972_v21, %v756_v20  ;;  %v752_v26 = vld [vmem:[#allocation7 + $0x70] sm:$0xf]  ;;  %v971_v27 = vld [vmem:[#allocation7 + $0x88] sm:$0xf0] }
  0x1d   :  { %159 = vmatpush.bf16.msra.mxu0 %v769_v5  ;;  %v793_v28 = vor.u32 %v981_v24, %v792_v23  ;;  %v753_v29 = vor.u32 %v971_v27, %v752_v26  ;;  %v748_v30 = vld [vmem:[#allocation7 + $0x38] sm:$0xf]  ;;  %v970_v31 = vld [vmem:[#allocation7 + $0x50] sm:$0xf0]  ;;  %v744_v33 = vld [vmem:[#allocation7] sm:$0xf] }
  0x1e   :  { %v749_v32 = vor.u32 %v970_v31, %v748_v30  ;;  %v969_v34 = vld [vmem:[#allocation7 + $0x18] sm:$0xf0]  ;;  %v968_v36 = vld [vmem:[#allocation2] sm:$0xff]  ;;  %v784_v40 = vld [vmem:[#allocation7 + $0x74] sm:$0xf]  ;;  %s1220_s2 = smov [#allocation11]  }
  0x1f   :  { %244 = vmatpush.bf16.msra.mxu1 %v801_v16  ;;  %v745_v35 = vor.u32 %v969_v34, %v744_v33  ;;  %v788_v37 = vld [vmem:[#allocation7 + $0xac] sm:$0xf]  ;;  %v980_v38 = vld [vmem:[#allocation7 + $0xc4] sm:$0xf0]  ;;  %v979_v41 = vld [vmem:[#allocation7 + $0x8c] sm:$0xf0] }
  0x20   :  { %v789_v39 = vor.u32 %v980_v38, %v788_v37  ;;  %v785_v42 = vor.u32 %v979_v41, %v784_v40  ;;  %v780_v43 = vld [vmem:[#allocation7 + $0x3c] sm:$0xf]  ;;  %v978_v44 = vld [vmem:[#allocation7 + $0x54] sm:$0xf0]  ;;  %v776_v46 = vld [vmem:[#allocation7 + $0x4] sm:$0xf] }
  0x21   :  { %160 = vmatpush.bf16.msra.mxu0 %v765_v12  ;;  %v781_v45 = vor.u32 %v978_v44, %v780_v43  ;;  %v977_v47 = vld [vmem:[#allocation7 + $0x1c] sm:$0xf0]  ;;  %v864_v49 = vld [vmem:[#allocation7 + $0x190] sm:$0xf]  ;;  %v1000_v50 = vld [vmem:[#allocation7 + $0x1a8] sm:$0xf0] }
  0x22   :  { %v777_v48 = vor.u32 %v977_v47, %v776_v46  ;;  %v999_v51 = vld [vmem:[#allocation7 + $0x194] sm:$0xf]  ;;  %v865_v52 = vor.u32 %v1000_v50, %v864_v49  ;;  %v866_v53 = vld [vmem:[#allocation7 + $0x1ac] sm:$0xf0]  ;;  %v856_v54 = vld [vmem:[#allocation7 + $0x158] sm:$0xf] }
  0x23   :  { %245 = vmatpush.bf16.msra.mxu1 %v797_v22  ;;  %v998_v55 = vld [vmem:[#allocation7 + $0x170] sm:$0xf0]  ;;  %v869_v56 = vor.u32 %v999_v51, %v866_v53  ;;  %v997_v57 = vld [vmem:[#allocation7 + $0x15c] sm:$0xf]  ;;  %v858_v58 = vld [vmem:[#allocation7 + $0x174] sm:$0xf0] }
  0x24   :  { %362 = vmatpush.bf16.msra.mxu2 %v865_v52  ;;  %v857_v59 = vor.u32 %v998_v55, %v856_v54  ;;  %v861_v60 = vor.u32 %v997_v57, %v858_v58  ;;  %v848_v61 = vld [vmem:[#allocation7 + $0x120] sm:$0xf]  ;;  %v996_v62 = vld [vmem:[#allocation7 + $0x138] sm:$0xf0]  ;;  %v995_v63 = vld [vmem:[#allocation7 + $0x124] sm:$0xf] }
  0x25   :  { %161 = vmatpush.bf16.msra.mxu0 %v761_v19  ;;  %376 = vmatpush.bf16.msra.mxu3 %v869_v56  ;;  %v850_v0 = vld [vmem:[#allocation7 + $0x13c] sm:$0xf0]  ;;  %v849_v1 = vor.u32 %v996_v62, %v848_v61  ;;  %v840_v3 = vld [vmem:[#allocation7 + $0xe8] sm:$0xf]  ;;  %v994_v4 = vld [vmem:[#allocation7 + $0x100] sm:$0xf0] }
  0x26   :  { %v853_v2 = vor.u32 %v995_v63, %v850_v0  ;;  %v993_v5 = vld [vmem:[#allocation7 + $0xec] sm:$0xf]  ;;  %v842_v6 = vld [vmem:[#allocation7 + $0x104] sm:$0xf0]  ;;  %v841_v7 = vor.u32 %v994_v4, %v840_v3  ;;  %v1039_v10 = vld [vmem:[#allocation8] ss:$0 sm:$0xff] }
  0x27   :  { %246 = vmatpush.bf16.msra.mxu1 %v793_v28  ;;  %v845_v8 = vor.u32 %v993_v5, %v842_v6  ;;  %v832_v17 = vld [vmem:[#allocation7 + $0xb0] sm:$0xf]  ;;  %v992_v18 = vld [vmem:[#allocation7 + $0xc8] sm:$0xf0]  ;;  %v991_v19 = vld [vmem:[#allocation7 + $0xb4] sm:$0xf] }
  0x28   :  { %363 = vmatpush.bf16.msra.mxu2 %v857_v59  ;;  %v833_v20 = vor.u32 %v992_v18, %v832_v17  ;;  %v834_v21 = vld [vmem:[#allocation7 + $0xcc] sm:$0xf0]  ;;  %v824_v23 = vld [vmem:[#allocation7 + $0x78] sm:$0xf]  ;;  %v990_v24 = vld [vmem:[#allocation7 + $0x90] sm:$0xf0] }
  0x29   :  { %162 = vmatpush.bf16.msra.mxu0 %v757_v25  ;;  %377 = vmatpush.bf16.msra.mxu3 %v861_v60  ;;  %v837_v22 = vor.u32 %v991_v19, %v834_v21  ;;  %v989_v25 = vld [vmem:[#allocation7 + $0x7c] sm:$0xf]  ;;  %v825_v26 = vor.u32 %v990_v24, %v824_v23  ;;  %v826_v27 = vld [vmem:[#allocation7 + $0x94] sm:$0xf0]  ;;  %v987_v31 = vld [vmem:[#allocation7 + $0x44] sm:$0xf] }
  0x2a   :  { %v829_v28 = vor.u32 %v989_v25, %v826_v27  ;;  %v988_v30 = vld [vmem:[#allocation7 + $0x58] sm:$0xf0]  ;;  %v818_v33 = vld [vmem:[#allocation7 + $0x5c] sm:$0xf0]  ;;  %v985_v37 = vld [vmem:[#allocation7 + $0xc] sm:$0xf] }
  0x2b   :  { %247 = vmatpush.bf16.msra.mxu1 %v789_v39  ;;  %v821_v34 = vor.u32 %v987_v31, %v818_v33  ;;  %v810_v39 = vld [vmem:[#allocation7 + $0x24] sm:$0xf0]  ;;  %v900_v41 = vld [vmem:[#allocation7 + $0x198] sm:$0xf]  ;;  %v896_v52 = vld [vmem:[#allocation7 + $0x160] sm:$0xf] }
  0x2c   :  { %364 = vmatpush.bf16.msra.mxu2 %v849_v1  ;;  %v813_v40 = vor.u32 %v985_v37, %v810_v39  ;;  %v1007_v53 = vld [vmem:[#allocation7 + $0x178] sm:$0xf0]  ;;  %v892_v55 = vld [vmem:[#allocation7 + $0x128] sm:$0xf]  ;;  %v1006_v56 = vld [vmem:[#allocation7 + $0x140] sm:$0xf0] }
  0x2d   :  { %163 = vmatpush.bf16.msra.mxu0 %v753_v29  ;;  %378 = vmatpush.bf16.msra.mxu3 %v853_v2  ;;  %v816_v29 = vld [vmem:[#allocation7 + $0x40] sm:$0xf]  ;;  %v897_v54 = vor.u32 %v1007_v53, %v896_v52  ;;  %v893_v57 = vor.u32 %v1006_v56, %v892_v55  ;;  %v888_v58 = vld [vmem:[#allocation7 + $0xf0] sm:$0xf]  ;;  %v1005_v59 = vld [vmem:[#allocation7 + $0x108] sm:$0xf0] }
  0x2e   :  { %v889_v60 = vor.u32 %v1005_v59, %v888_v58  ;;  %v884_v61 = vld [vmem:[#allocation7 + $0xb8] sm:$0xf]  ;;  %v1004_v62 = vld [vmem:[#allocation7 + $0xd0] sm:$0xf0]  ;;  %v880_v0 = vld [vmem:[#allocation7 + $0x80] sm:$0xf] }
  0x2f   :  { %248 = vmatpush.bf16.msra.mxu1 %v785_v42  ;;  %v1008_v42 = vld [vmem:[#allocation7 + $0x1b0] sm:$0xf0]  ;;  %v885_v63 = vor.u32 %v1004_v62, %v884_v61  ;;  %v1003_v1 = vld [vmem:[#allocation7 + $0x98] sm:$0xf0]  ;;  %v876_v2 = vld [vmem:[#allocation7 + $0x48] sm:$0xf] }
  0x30   :  { %365 = vmatpush.bf16.msra.mxu2 %v841_v7  ;;  %v901_v43 = vor.u32 %v1008_v42, %v900_v41  ;;  %v881_v3 = vor.u32 %v1003_v1, %v880_v0  ;;  %v1002_v4 = vld [vmem:[#allocation7 + $0x60] sm:$0xf0]  ;;  %v872_v6 = vld [vmem:[#allocation7 + $0x10] sm:$0xf]  ;;  %v1001_v7 = vld [vmem:[#allocation7 + $0x28] sm:$0xf0] }
  0x31   :  { %164 = vmatpush.bf16.msra.mxu0 %v749_v32  ;;  %379 = vmatpush.bf16.msra.mxu3 %v845_v8  ;;  %v817_v32 = vor.u32 %v988_v30, %v816_v29  ;;  %v877_v5 = vor.u32 %v1002_v4, %v876_v2  ;;  %v873_v8 = vor.u32 %v1001_v7, %v872_v6  ;;  %v1014_v21 = vld [vmem:[#allocation7 + $0x144] sm:$0xf0]  ;;  %v1013_v27 = vld [vmem:[#allocation7 + $0x10c] sm:$0xf0]  ;;  %v1024_v58 = vld [vmem:[#allocation7 + $0x1b8] sm:$0xf0] }
  0x32   :  { %v390_v37 = vld [vmem:[#allocation5] sm:$0xff]  ;;  %v1010_v52 = vld [vmem:[#allocation7 + $0x64] sm:$0xf0]  ;;  %v1023_v61 = vld [vmem:[#allocation7 + $0x180] sm:$0xf0]  ;;  %s716_s3 = sshll.u32 %s1220_s2, 4  ;;  %s717_s3 = int_to_ptr.vmem [resolvable:$true] %s716_s3 }
  0x33   :  { %249 = vmatpush.bf16.msra.mxu1 %v781_v45  ;;  %v1040_v45 = vld [vmem:[#allocation8 + $0x1] ss:$0 sm:$0xff]  ;;  %v1009_v55 = vld [vmem:[#allocation7 + $0x2c] sm:$0xf0]  ;;  %v960_v59 = vld [vmem:[#allocation7 + $0x168] sm:$0xf] }
  0x34   :  { %366 = vmatpush.bf16.msra.mxu2 %v833_v20  ;;  %v924_v20 = vld [vmem:[#allocation7 + $0x12c] sm:$0xf]  ;;  %v961_v62 = vor.u32 %v1023_v61, %v960_v59  ;;  %v952_v2 = vld [vmem:[#allocation7 + $0xf8] sm:$0xf]  ;;  %v1041_v6 = vld [vmem:[#allocation8 + $0x4] ss:$0 sm:$0xff] }
  0x35   :  { %165 = vmatpush.bf16.msra.mxu0 %v745_v35  ;;  %380 = vmatpush.bf16.msra.mxu3 %v837_v22  ;;  %v808_v35 = vld [vmem:[#allocation7 + $0x8] sm:$0xf]  ;;  %v925_v25 = vor.u32 %v1014_v21, %v924_v20  ;;  %v1022_v0 = vld [vmem:[#allocation7 + $0x148] sm:$0xf0]  ;;  %s718_s19 = sshll.u32 %s1283_s5, 4  ;;  %s1221_s20 = smov 256   ;;  %s719_s19 = int_to_ptr.hbm [resolvable:$true] %s718_s19 }
  0x36   :  { %v1018_v20 = vld [vmem:[#allocation7 + $0x68] sm:$0xf0]  ;;  %s1222_s21 = smov 16   ;;  %s1223_s5 = smov [#allocation10]  }
  0x37   :  { %250 = vmatpush.bf16.msra.mxu1 %v777_v48  ;;  %s703_s22 = sshll.u32 %s1223_s5, 4  ;;  %s705_s25 = sshll.u32 %s1282_s4, 4  ;;  %s704_s22 = int_to_ptr.vmem [resolvable:$true] %s703_s22  ;;  %s706_s25 = int_to_ptr.hbm [resolvable:$true] %s705_s25 }
  0x38   :  { %166 = vmatmul.bf16.vlgmr.msra.gmra.mxu0 %v968_v36  ;;  %367 = vmatpush.bf16.msra.mxu2 %v825_v26  ;;  %v986_v36 = vld [vmem:[#allocation7 + $0x20] sm:$0xf0]  ;;  %v920_v26 = vld [vmem:[#allocation7 + $0xf4] sm:$0xf] }
  0x39   :  { %381 = vmatpush.bf16.msra.mxu3 %v829_v28  ;;  %v809_v38 = vor.u32 %v986_v36, %v808_v35  ;;  %471 = vmatpush.bf16.msrb.mxu0 %v901_v43  ;;  %v921_v29 = vor.u32 %v1013_v27, %v920_v26  ;;  %v1042_v26 = vld [vmem:[#allocation8 + $0x5] ss:$0 sm:$0xff] }
  0x3c   :  { %368 = vmatpush.bf16.msra.mxu2 %v817_v32 }
  0x3d   :  { %382 = vmatpush.bf16.msra.mxu3 %v821_v34  ;;  %472 = vmatpush.bf16.msrb.mxu0 %v897_v54  ;;  %v904_v54 = vld [vmem:[#allocation7 + $0x14] sm:$0xf] }
  0x3e   :  { %v905_v56 = vor.u32 %v1009_v55, %v904_v54 }
  0x40   :  { %369 = vmatpush.bf16.msra.mxu2 %v809_v38  ;;  %v391_v38 = vld [vmem:[#allocation5 + $0x8] sm:$0xff] }
  0x41   :  { %383 = vmatpush.bf16.msra.mxu3 %v813_v40  ;;  %473 = vmatpush.bf16.msrb.mxu0 %v893_v57  ;;  %v964_v57 = vld [vmem:[#allocation7 + $0x1a0] sm:$0xf] }
  0x45   :  { %474 = vmatpush.bf16.msrb.mxu0 %v889_v60  ;;  %v965_v60 = vor.u32 %v1024_v58, %v964_v57 }
  0x47   :  { %641 = vmatpush.bf16.msrb.mxu2 %v965_v60 }
  0x49   :  { %475 = vmatpush.bf16.msrb.mxu0 %v885_v63  ;;  %v956_v63 = vld [vmem:[#allocation7 + $0x130] sm:$0xf] }
  0x4a   :  { %v957_v1 = vor.u32 %v1022_v0, %v956_v63 }
  0x4b   :  { %642 = vmatpush.bf16.msrb.mxu2 %v961_v62 }
  0x4d   :  { %476 = vmatpush.bf16.msrb.mxu0 %v881_v3  ;;  %v1021_v3 = vld [vmem:[#allocation7 + $0x110] sm:$0xf0] }
  0x4e   :  { %v953_v4 = vor.u32 %v1021_v3, %v952_v2 }
  0x4f   :  { %643 = vmatpush.bf16.msrb.mxu2 %v957_v1 }
  0x51   :  { %477 = vmatpush.bf16.msrb.mxu0 %v877_v5 }
  0x53   :  { %644 = vmatpush.bf16.msrb.mxu2 %v953_v4 }
  0x55   :  { %478 = vmatpush.bf16.msrb.mxu0 %v873_v8 }
  0xb5   :  { %v167_v9 = vpop.f32.mrf.mxu0 }
  0xb6   :  { %v168_v11 = vadd.f32 %v1039_v10, %v167_v9  ;;  %v275_v9 = vld [vmem:[#allocation8 + $0x2] sm:$0x3] }
  0xb8   :  { %v172_v14 = vmax.f32 %v168_v11, 0.0  ;;  %v1016_v11 = vld [vmem:[#allocation7 + $0x1b4] sm:$0xf0] }
  0xbd   :  { %v169_v12 = vpop.f32.mrf.mxu0 }
  0xbe   :  { %v170_v13 = vadd.f32 %v1039_v10, %v169_v12  ;;  %v932_v10 = vld [vmem:[#allocation7 + $0x19c] sm:$0xf]  ;;  %v928_v12 = vld [vmem:[#allocation7 + $0x164] sm:$0xf] }
  0xc0   :  { %v173_v15 = vmax.f32 %v170_v13, 0.0  ;;  %v278_v13 = vperm.slane %v275_v9, 0 }
  0xc2   :  { %v191_v16 = vpack.c.bf16 %v173_v15, %v172_v14  ;;  %v279_v14 = vperm.slane %v275_v9, 1  ;;  %v933_v15 = vor.u32 %v1016_v11, %v932_v10 }
  0xc4   :  { %251 = vmatmul.bf16.vlgmr.msra.gmra.mxu1 %v191_v16  ;;  %v1015_v16 = vld [vmem:[#allocation7 + $0x17c] sm:$0xf0] }
  0xc5   :  { %556 = vmatpush.bf16.msrb.mxu1 %v933_v15  ;;  %v929_v17 = vor.u32 %v1015_v16, %v928_v12  ;;  %v944_v16 = vld [vmem:[#allocation7 + $0x88] sm:$0xf] }
  0xc9   :  { %557 = vmatpush.bf16.msrb.mxu1 %v929_v17  ;;  %v1019_v17 = vld [vmem:[#allocation7 + $0xa0] sm:$0xf0] }
  0xcd   :  { %558 = vmatpush.bf16.msrb.mxu1 %v925_v25 }
  0xd1   :  { %559 = vmatpush.bf16.msrb.mxu1 %v921_v29 }
 0x141   :  { %v252_v44 = vpop.f32.mrf.mxu1 }
 0x142   :  { %v253_v46 = vadd.f32 %v1040_v45, %v252_v44 }
 0x144   :  { %v257_v49 = vmax.f32 %v253_v46, 0.0  ;;  %v1012_v46 = vld [vmem:[#allocation7 + $0xd4] sm:$0xf0] }
 0x149   :  { %v254_v47 = vpop.f32.mrf.mxu1 }
 0x14a   :  { %v255_v48 = vadd.f32 %v1040_v45, %v254_v47  ;;  %v916_v45 = vld [vmem:[#allocation7 + $0xbc] sm:$0xf] }
 0x14b   :  { %v917_v47 = vor.u32 %v1012_v46, %v916_v45 }
 0x14c   :  { %v258_v50 = vmax.f32 %v255_v48, 0.0  ;;  %v912_v48 = vld [vmem:[#allocation7 + $0x84] sm:$0xf] }
 0x14d   :  { %560 = vmatpush.bf16.msrb.mxu1 %v917_v47 }
 0x14e   :  { %v276_v51 = vpack.c.bf16 %v258_v50, %v257_v49  ;;  %v1011_v49 = vld [vmem:[#allocation7 + $0x9c] sm:$0xf0] }
 0x14f   :  { %v913_v50 = vor.u32 %v1011_v49, %v912_v48 }
 0x150   :  { %370 = vmatmul.bf16.vlgmr.msra.gmra.mxu2 %v276_v51  ;;  %384 = vmatmul.bf16.vlgmr.msra.gmra.mxu3 %v276_v51  ;;  %v908_v51 = vld [vmem:[#allocation7 + $0x4c] sm:$0xf] }
 0x151   :  { %561 = vmatpush.bf16.msrb.mxu1 %v913_v50  ;;  %v909_v53 = vor.u32 %v1010_v52, %v908_v51 }
 0x155   :  { %562 = vmatpush.bf16.msrb.mxu1 %v909_v53 }
 0x159   :  { %563 = vmatpush.bf16.msrb.mxu1 %v905_v56 }
 0x1d3   :  { %v371_v18 = vpop.f32.mrf.mxu2  ;;  %v385_v19 = vpop.f32.mrf.mxu3 }
 0x1d4   :  { %v372_v22 = vadd.f32 %v371_v18, %v278_v13  ;;  %v386_v23 = vadd.f32 %v385_v19, %v279_v14  ;;  %v945_v18 = vor.u32 %v1019_v17, %v944_v16  ;;  %v940_v19 = vld [vmem:[#allocation7 + $0x50] sm:$0xf] }
 0x1d5   :  { %v941_v21 = vor.u32 %v1018_v20, %v940_v19 }
 0x1d6   :  { %695 = vst [vmem:[#allocation11] sm:$0xff] %v372_v22  ;;  %v392_v24 = vmul.f32 0.5, %v386_v23 }
 0x1d7   :  { %696 = vst [vmem:[#allocation11 + $0x8] sm:$0xff] %v386_v23  ;;  %v1017_v23 = vld [vmem:[#allocation7 + $0x30] sm:$0xf0] }
 0x1d8   :  { %v394_v28 = vmul.f32 1.442695, %v392_v24 }
 0x1da   :  { %1044 = vpow2.f32 %v394_v28 }
 0x1db   :  { %v373_v30 = vpop.f32.mrf.mxu2  ;;  %v387_v31 = vpop.f32.mrf.mxu3 }
 0x1dc   :  { %v374_v32 = vadd.f32 %v373_v30, %v278_v13  ;;  %v388_v33 = vadd.f32 %v387_v31, %v279_v14  ;;  %v948_v13 = vld [vmem:[#allocation7 + $0xc0] sm:$0xf]  ;;  %v1020_v14 = vld [vmem:[#allocation7 + $0xd8] sm:$0xf0] }
 0x1dd   :  { %v949_v15 = vor.u32 %v1020_v14, %v948_v13 }
 0x1de   :  { %697 = vst [vmem:[#allocation11 + $0x10] sm:$0xff] %v374_v32  ;;  %v393_v34 = vmul.f32 0.5, %v388_v33 }
 0x1df   :  { %698 = vst [vmem:[#allocation11 + $0x18] sm:$0xff] %v388_v33  ;;  %645 = vmatpush.bf16.msrb.mxu2 %v949_v15  ;;  %v1043_v33 = vld [vmem:[#allocation8 + $0x6] ss:$0 sm:$0xff] }
 0x1e0   :  { %v396_v35 = vmul.f32 1.442695, %v393_v34  ;;  %v1045_v36 = vpop.eup %1044  ;;  %724 = dma.vmem_to_hbm [thread:$0]  %s717_s3, 512, %s719_s19, [#allocation12], %s1221_s20, %s1221_s20, %s1222_s21  }
 0x1e1   :  { %v398_v39 = vmul.f32 %v1045_v36, %v390_v37 }
 0x1e2   :  { %1046 = vpow2.f32 %v396_v35 }
 0x1e3   :  { %v400_v42 = vadd.f32 %v398_v39, %v372_v22  ;;  %646 = vmatpush.bf16.msrb.mxu2 %v945_v18  ;;  %v936_v22 = vld [vmem:[#allocation7 + $0x18] sm:$0xf] }
 0x1e4   :  { %v937_v24 = vor.u32 %v1017_v23, %v936_v22 }
 0x1e7   :  { %647 = vmatpush.bf16.msrb.mxu2 %v941_v21 }
 0x1e8   :  { %v1047_v40 = vpop.eup %1046 }
 0x1e9   :  { %v399_v41 = vmul.f32 %v1047_v40, %v391_v38 }
 0x1eb   :  { %v401_v43 = vadd.f32 %v399_v41, %v374_v32  ;;  %648 = vmatpush.bf16.msrb.mxu2 %v937_v24 }
 0x1ed   :  { %v419_v44 = vpack.c.bf16 %v401_v43, %v400_v42 }
 0x1ef   :  { %479 = vmatmul.bf16.vlgmr.msrb.gmra.mxu0 %v419_v44 }
 0x26c   :  { %v480_v5 = vpop.f32.mrf.mxu0 }
 0x26d   :  { %v481_v7 = vadd.f32 %v1041_v6, %v480_v5 }
 0x26f   :  { %v485_v10 = vmax.f32 %v481_v7, 0.0 }
 0x274   :  { %v482_v8 = vpop.f32.mrf.mxu0 }
 0x275   :  { %v483_v9 = vadd.f32 %v1041_v6, %v482_v8 }
 0x277   :  { %v486_v11 = vmax.f32 %v483_v9, 0.0 }
 0x279   :  { %v504_v12 = vpack.c.bf16 %v486_v11, %v485_v10 }
 0x27b   :  { %564 = vmatmul.bf16.vlgmr.msrb.gmra.mxu1 %v504_v12 }
 0x2f8   :  { %v565_v25 = vpop.f32.mrf.mxu1 }
 0x2f9   :  { %v566_v27 = vadd.f32 %v1042_v26, %v565_v25 }
 0x2fb   :  { %v570_v30 = vmax.f32 %v566_v27, 0.0 }
 0x300   :  { %v567_v28 = vpop.f32.mrf.mxu1 }
 0x301   :  { %v568_v29 = vadd.f32 %v1042_v26, %v567_v28 }
 0x303   :  { %v571_v31 = vmax.f32 %v568_v29, 0.0 }
 0x305   :  { %v589_v32 = vpack.c.bf16 %v571_v31, %v570_v30 }
 0x307   :  { %649 = vmatmul.bf16.vlgmr.msrb.gmra.mxu2 %v589_v32 }
 0x38a   :  { %v650_v34 = vpop.f32.mrf.mxu2 }
 0x38b   :  { %v651_v35 = vadd.f32 %v1043_v33, %v650_v34 }
 0x38d   :  { %v966_v36 = vmul.f32 -1.442695, %v651_v35 }
 0x38f   :  { %1048 = vpow2.f32 %v966_v36 }
 0x392   :  { %v652_v37 = vpop.f32.mrf.mxu2 }
 0x393   :  { %v653_v38 = vadd.f32 %v1043_v33, %v652_v37 }
 0x395   :  { %v1049_v39 = vpop.eup %1048  ;;  %v967_v40 = vmul.f32 -1.442695, %v653_v38 }
 0x396   :  { %v661_v41 = vadd.f32 1.0, %v1049_v39 }
 0x397   :  { %1050 = vpow2.f32 %v967_v40 }
 0x398   :  { %1052 = vrcp.f32 %v661_v41  ;;  %v674_v47 = vand.u32 2147483648, %v661_v41  ;;  %v672_v49 = vand.u32 2147483647, %v661_v41  ;;  %vm668_vm1 = vweird.f32 %v661_v41 }
 0x39a   :  { %v675_v52 = vor.u32 1.1754944e-38, %v674_v47  ;;  %vm673_vm3 = vcmp.eq.f32.partialorder %v672_v49, 8.507059e+37 }
 0x39d   :  { %v1051_v42 = vpop.eup %1050 }
 0x39e   :  { %v1053_v43 = vpop.eup %1052  ;;  %v662_v44 = vadd.f32 1.0, %v1051_v42 }
 0x39f   :  { %v664_v45 = vmul.f32 %v1053_v43, %v661_v41  ;;  %vm669_vm0 = vweird.f32 %v1053_v43 }
 0x3a0   :  { %1054 = vrcp.f32 %v662_v44  ;;  %vm670_vm2 = vmor %vm668_vm1, %vm669_vm0  ;;  %v689_v57 = vand.u32 2147483648, %v662_v44  ;;  %v687_v59 = vand.u32 2147483647, %v662_v44  ;;  %vm683_vm5 = vweird.f32 %v662_v44 }
 0x3a1   :  { %v665_v46 = vsub.f32 1.0, %v664_v45 }
 0x3a2   :  { %v690_v61 = vor.u32 1.1754944e-38, %v689_v57  ;;  %vm688_vm7 = vcmp.eq.f32.partialorder %v687_v59, 8.507059e+37 }
 0x3a3   :  { %v666_v48 = vmul.f32 %v1053_v43, %v665_v46 }
 0x3a5   :  { %v667_v50 = vadd.f32 %v1053_v43, %v666_v48 }
 0x3a6   :  { %v1055_v51 = vpop.eup %1054 }
 0x3a7   :  { %v679_v53 = vmul.f32 %v1055_v51, %v662_v44  ;;  %v671_v54 = vsel %vm670_vm2, %v1053_v43, %v667_v50  ;;  %vm684_vm4 = vweird.f32 %v1055_v51 }
 0x3a8   :  { %v676_v55 = vsel %vm673_vm3, %v675_v52, %v671_v54  ;;  %vm685_vm6 = vmor %vm683_vm5, %vm684_vm4 }
 0x3a9   :  { %v680_v56 = vsub.f32 1.0, %v679_v53  ;;  %693 = vst [vmem:[#allocation10] sm:$0xff] %v676_v55 }
 0x3ab   :  { %v681_v58 = vmul.f32 %v1055_v51, %v680_v56 }
 0x3ad   :  { %v682_v60 = vadd.f32 %v1055_v51, %v681_v58 }
 0x3af   :  { %v686_v62 = vsel %vm685_vm6, %v1055_v51, %v682_v60 }
 0x3b0   :  { %v691_v63 = vsel %vm688_vm7, %v690_v61, %v686_v62 }
 0x3b1   :  { %694 = vst [vmem:[#allocation10 + $0x8] sm:$0xff] %v691_v63 }
 0x3b2   :  { %711 = dma.vmem_to_hbm [thread:$0]  %s704_s22, 256, %s706_s25, [#allocation4], %s1211_s26, %s1211_s26, %s1212_s27  }
 0x3b3   :  { %1206 = dma.done.wait [#allocation4], 256  }
 0x3b4   :  { %1207 = vsyncadd [#allocation4], 4294967040 }
 0x3b5   :  { %1208 = dma.done.wait [#allocation12], 512  }
 0x3b6   :  { %1209 = vsyncadd [#allocation12], 4294966784 }
 0x3b7   :  { %733 = vsyncpa [#allocation3], 1 }
 0x3b8   :  { %734 = vsyncpa [#allocation6], 1 }
 0x3b9   :  { %735 = vsyncpa [#allocation9], 1 }
 0x3ba   :  { %736 = vsyncpa [#allocation4], 1 }
 0x3bb   :  { %737 = vsyncpa [#allocation12], 1 }

</bundles_post_ra>
